<compile_context>
chip_gen: v6e
topology: v6e:2x2x1
jax: 0.10.0
libtpu: 0.0.40
codegen_flags: <defaults>
</compile_context>

<pallas_src>
import math
import functools

import jax
import jax.numpy as jnp
from jax import lax
from jax.experimental import pallas as pl
from jax.experimental.pallas import tpu as pltpu

VMEM_LIMIT = 32 * 1024 * 1024  # safe on v5e/v6e/v7x; above v5e's 16 MiB scoped default


def _pick_tile(dim, target, align):
    """Largest multiple of `align` <= target that divides dim; else the full dim."""
    if dim <= target:
        return dim
    t = (target // align) * align
    while t >= align:
        if dim % t == 0:
            return t
        t -= align
    return dim


# ----------------------------- tiled linear (matmul + bias [+ GELU]) -----------------------------

def _linear_kernel(x_ref, w_ref, b_ref, o_ref, acc_ref, *, act):
    @pl.when(pl.program_id(2) == 0)
    def _():
        acc_ref[...] = jnp.zeros_like(acc_ref)

    acc_ref[...] += jnp.dot(x_ref[...], w_ref[...],
                            preferred_element_type=jnp.float32)

    @pl.when(pl.program_id(2) == pl.num_programs(2) - 1)
    def _():
        y = acc_ref[...] + b_ref[...]
        if act == "gelu":
            # exact (erf-based) GELU in f32, matching HF BERT's default activation
            y = 0.5 * y * (1.0 + lax.erf(y * (1.0 / math.sqrt(2.0))))
        o_ref[...] = y.astype(o_ref.dtype)


def linear(x, w, b, act=None, out_dtype=jnp.float32,
           tm_target=256, tn_target=256, tk_target=512):
    M, K = x.shape
    N = w.shape[1]
    tm = _pick_tile(M, tm_target, 8)
    tn = _pick_tile(N, tn_target, 128)
    tk = _pick_tile(K, tk_target, 128)
    xb = x.astype(jnp.bfloat16)          # bf16 MXU operands, f32 accumulation
    wb = w.astype(jnp.bfloat16)
    bias = b.reshape(1, N).astype(jnp.float32)
    return pl.pallas_call(
        functools.partial(_linear_kernel, act=act),
        out_shape=jax.ShapeDtypeStruct((M, N), out_dtype),
        grid=(M // tm, N // tn, K // tk),
        in_specs=[pl.BlockSpec((tm, tk), lambda i, j, k: (i, k)),
                  pl.BlockSpec((tk, tn), lambda i, j, k: (k, j)),
                  pl.BlockSpec((1, tn), lambda i, j, k: (0, j))],
        out_specs=pl.BlockSpec((tm, tn), lambda i, j, k: (i, j)),
        scratch_shapes=[pltpu.VMEM((tm, tn), jnp.float32)],
        compiler_params=pltpu.CompilerParams(
            dimension_semantics=("parallel", "parallel", "arbitrary"),
            vmem_limit_bytes=VMEM_LIMIT),
    )(xb, wb, bias)


# ----------------------------- LayerNorm (row-tiled; with / without residual) -----------------------------

def _ln_kernel(x_ref, g_ref, b_ref, o_ref, *, eps):
    h = x_ref[...]
    mu = jnp.mean(h, axis=-1, keepdims=True)
    var = jnp.mean((h - mu) ** 2, axis=-1, keepdims=True)
    o_ref[...] = (h - mu) * lax.rsqrt(var + eps) * g_ref[...] + b_ref[...]


def _add_ln_kernel(x_ref, r_ref, g_ref, b_ref, o_ref, *, eps):
    h = x_ref[...] + r_ref[...]
    mu = jnp.mean(h, axis=-1, keepdims=True)
    var = jnp.mean((h - mu) ** 2, axis=-1, keepdims=True)
    o_ref[...] = (h - mu) * lax.rsqrt(var + eps) * g_ref[...] + b_ref[...]


def layernorm(x, gamma, beta, eps=1e-12, tm_target=256):
    M, H = x.shape
    tm = _pick_tile(M, tm_target, 8)
    return pl.pallas_call(
        functools.partial(_ln_kernel, eps=eps),
        out_shape=jax.ShapeDtypeStruct((M, H), jnp.float32),
        grid=(M // tm,),
        in_specs=[pl.BlockSpec((tm, H), lambda i: (i, 0)),
                  pl.BlockSpec((1, H), lambda i: (0, 0)),
                  pl.BlockSpec((1, H), lambda i: (0, 0))],
        out_specs=pl.BlockSpec((tm, H), lambda i: (i, 0)),
        compiler_params=pltpu.CompilerParams(
            dimension_semantics=("parallel",), vmem_limit_bytes=VMEM_LIMIT),
    )(x, gamma.reshape(1, H), beta.reshape(1, H))


def add_layernorm(x, res, gamma, beta, eps=1e-12, tm_target=256):
    M, H = x.shape
    tm = _pick_tile(M, tm_target, 8)
    return pl.pallas_call(
        functools.partial(_add_ln_kernel, eps=eps),
        out_shape=jax.ShapeDtypeStruct((M, H), jnp.float32),
        grid=(M // tm,),
        in_specs=[pl.BlockSpec((tm, H), lambda i: (i, 0)),
                  pl.BlockSpec((tm, H), lambda i: (i, 0)),
                  pl.BlockSpec((1, H), lambda i: (0, 0)),
                  pl.BlockSpec((1, H), lambda i: (0, 0))],
        out_specs=pl.BlockSpec((tm, H), lambda i: (i, 0)),
        compiler_params=pltpu.CompilerParams(
            dimension_semantics=("parallel",), vmem_limit_bytes=VMEM_LIMIT),
    )(x, res, gamma.reshape(1, H), beta.reshape(1, H))


# ----------------------------- flash attention (online softmax, in-kernel mask) -----------------------------

def _flash_attn_kernel(q_ref, k_ref, v_ref, o_ref, m_ref, l_ref, acc_ref,
                       *, scale, causal, content_len, tq, tkv):
    ki = pl.program_id(2)

    @pl.when(ki == 0)
    def _():
        m_ref[...] = jnp.full_like(m_ref, -jnp.inf)
        l_ref[...] = jnp.zeros_like(l_ref)
        acc_ref[...] = jnp.zeros_like(acc_ref)

    q = q_ref[0]           # (tq, hd)  bf16
    k = k_ref[0]           # (tkv, hd) bf16
    v = v_ref[0]           # (tkv, hd) bf16

    s = lax.dot_general(q, k, (((1,), (1,)), ((), ())),
                        preferred_element_type=jnp.float32) * scale   # (tq, tkv) f32

    if causal:
        # tril mask + "first content_len columns always visible", generated in-kernel
        qi = pl.program_id(1)
        row = qi * tq + lax.broadcasted_iota(jnp.int32, (tq, tkv), 0)
        col = ki * tkv + lax.broadcasted_iota(jnp.int32, (tq, tkv), 1)
        allowed = (col <= row) | (col < content_len)
        s = jnp.where(allowed, s, -1e30)

    m_prev = m_ref[...]                                  # (tq, 1)
    m_new = jnp.maximum(m_prev, jnp.max(s, axis=-1, keepdims=True))
    alpha = jnp.exp(m_prev - m_new)
    p = jnp.exp(s - m_new)
    l_ref[...] = alpha * l_ref[...] + jnp.sum(p, axis=-1, keepdims=True)
    acc_ref[...] = alpha * acc_ref[...] + lax.dot_general(
        p.astype(v.dtype), v, (((1,), (0,)), ((), ())),
        preferred_element_type=jnp.float32)
    m_ref[...] = m_new

    @pl.when(ki == pl.num_programs(2) - 1)
    def _():
        o_ref[0] = (acc_ref[...] *
                    pl.reciprocal(l_ref[...], approx=True)).astype(o_ref.dtype)


def flash_attention(q, k, v, *, scale, causal, content_len,
                    tq_target=256, tkv_target=256):
    BH, S, hd = q.shape
    tq = _pick_tile(S, tq_target, 8)
    tkv = _pick_tile(S, tkv_target, 8)
    q_spec = pl.BlockSpec((1, tq, hd), lambda b, qi, ki: (b, qi, 0))
    kv_spec = pl.BlockSpec((1, tkv, hd), lambda b, qi, ki: (b, ki, 0))
    return pl.pallas_call(
        functools.partial(_flash_attn_kernel, scale=scale, causal=causal,
                          content_len=content_len, tq=tq, tkv=tkv),
        out_shape=jax.ShapeDtypeStruct((BH, S, hd), jnp.bfloat16),
        grid=(BH, S // tq, S // tkv),
        in_specs=[q_spec, kv_spec, kv_spec],
        out_specs=pl.BlockSpec((1, tq, hd), lambda b, qi, ki: (b, qi, 0)),
        scratch_shapes=[pltpu.VMEM((tq, 1), jnp.float32),
                        pltpu.VMEM((tq, 1), jnp.float32),
                        pltpu.VMEM((tq, hd), jnp.float32)],
        compiler_params=pltpu.CompilerParams(
            dimension_semantics=("parallel", "parallel", "arbitrary"),
            vmem_limit_bytes=VMEM_LIMIT),
    )(q, k, v)


# ----------------------------- classifier head: softmax / mean cross-entropy -----------------------------

def _softmax_kernel(x_ref, o_ref):
    x = x_ref[...]
    m = jnp.max(x, axis=-1, keepdims=True)
    e = jnp.exp(x - m)
    o_ref[...] = e * pl.reciprocal(jnp.sum(e, axis=-1, keepdims=True), approx=True)


def row_softmax(logits, tm_target=256):
    M, V = logits.shape
    tm = _pick_tile(M, tm_target, 8)
    return pl.pallas_call(
        _softmax_kernel,
        out_shape=jax.ShapeDtypeStruct((M, V), jnp.float32),
        grid=(M // tm,),
        in_specs=[pl.BlockSpec((tm, V), lambda i: (i, 0))],
        out_specs=pl.BlockSpec((tm, V), lambda i: (i, 0)),
        compiler_params=pltpu.CompilerParams(
            dimension_semantics=("parallel",), vmem_limit_bytes=VMEM_LIMIT),
    )(logits)


def _ce_kernel(x_ref, y_ref, o_ref, *, n_rows_total):
    @pl.when(pl.program_id(0) == 0)
    def _():
        o_ref[...] = jnp.zeros_like(o_ref)

    logits = x_ref[...]                                     # (tm, V) f32
    m = jnp.max(logits, axis=-1, keepdims=True)
    lse = jnp.log(jnp.sum(jnp.exp(logits - m), axis=-1, keepdims=True)) + m
    ids = lax.broadcasted_iota(jnp.int32, logits.shape, 1)
    onehot = (ids == y_ref[...]).astype(jnp.float32)        # y_ref: (tm, 1) int32
    tgt = jnp.sum(logits * onehot, axis=-1, keepdims=True)  # (tm, 1)
    o_ref[...] += jnp.sum(lse - tgt) / n_rows_total


def cross_entropy_mean(logits, y_flat, tm_target=256):
    M, V = logits.shape
    tm = _pick_tile(M, tm_target, 8)
    return pl.pallas_call(
        functools.partial(_ce_kernel, n_rows_total=M),
        out_shape=jax.ShapeDtypeStruct((1, 1), jnp.float32),
        grid=(M // tm,),
        in_specs=[pl.BlockSpec((tm, V), lambda i: (i, 0)),
                  pl.BlockSpec((tm, 1), lambda i: (i, 0))],
        out_specs=pl.BlockSpec((1, 1), lambda i: (0, 0)),
        compiler_params=pltpu.CompilerParams(
            dimension_semantics=("arbitrary",), vmem_limit_bytes=VMEM_LIMIT),
    )(logits, y_flat)


# ----------------------------- model (glue in plain JAX) -----------------------------

def init_params(key, *, vocab_size, hidden_size, n_layers, intermediate, max_pos):
    def n(k, shape, scale=0.02):
        return scale * jax.random.normal(k, shape, jnp.float32)

    ks = iter(jax.random.split(key, 8 + 8 * n_layers))
    H, V = hidden_size, vocab_size
    params = {
        "word_emb": n(next(ks), (V, H)),
        "pos_emb": n(next(ks), (max_pos, H)),
        "type_emb": n(next(ks), (2, H)),
        "emb_ln_g": jnp.ones((H,), jnp.float32),
        "emb_ln_b": jnp.zeros((H,), jnp.float32),
        "clf_w": n(next(ks), (H, V)),
        "clf_b": jnp.zeros((V,), jnp.float32),
        "layers": [],
    }
    for _ in range(n_layers):
        params["layers"].append({
            # fused Q/K/V projection: one (H, 3H) weight -> single matmul per layer
            "wqkv": n(next(ks), (H, 3 * H)), "bqkv": jnp.zeros((3 * H,), jnp.float32),
            "wo": n(next(ks), (H, H)), "bo": jnp.zeros((H,), jnp.float32),
            "ln1_g": jnp.ones((H,), jnp.float32), "ln1_b": jnp.zeros((H,), jnp.float32),
            "w1": n(next(ks), (H, intermediate)), "b1": jnp.zeros((intermediate,), jnp.float32),
            "w2": n(next(ks), (intermediate, H)), "b2": jnp.zeros((H,), jnp.float32),
            "ln2_g": jnp.ones((H,), jnp.float32), "ln2_b": jnp.zeros((H,), jnp.float32),
        })
    return params


def language_model_forward(params, x, y=None, *, n_heads):
    """Mirrors LanguageModel.forward: mean cross-entropy if y is given,
    otherwise softmax probabilities over the vocab."""
    B, S = x.shape
    H = params["word_emb"].shape[1]
    hd = H // n_heads

    # --- BERT embeddings (gathers are glue; LayerNorm in kernel, no dummy residual) ---
    emb = (params["word_emb"][x]
           + params["pos_emb"][:S][None, :, :]
           + params["type_emb"][0][None, None, :])
    h = layernorm(emb.reshape(B * S, H), params["emb_ln_g"], params["emb_ln_b"])

    # mask semantics of the torch reference: tril + first `content_len` columns cleared;
    # content_len = len(x) - len(y) (dim 0 of 2-D tensors), generated inside the kernel.
    causal = y is not None
    content_len = (x.shape[0] - y.shape[0]) if y is not None else 0
    scale = 1.0 / math.sqrt(hd)

    for p in params["layers"]:
        # fused QKV projection (bf16 output halves HBM traffic for the head split)
        qkv = linear(h, p["wqkv"], p["bqkv"], out_dtype=jnp.bfloat16)       # (B*S, 3H)
        # TODO(synk): head split/merge transposes remain XLA glue; folding them into the
        # attention kernel needs in-kernel lane-splitting reshapes (lowering risk).
        qkv = qkv.reshape(B, S, 3, n_heads, hd).transpose(2, 0, 3, 1, 4)    # (3,B,nH,S,hd)
        q = qkv[0].reshape(B * n_heads, S, hd)
        k = qkv[1].reshape(B * n_heads, S, hd)
        v = qkv[2].reshape(B * n_heads, S, hd)

        ctx = flash_attention(q, k, v, scale=scale, causal=causal,
                              content_len=content_len)                      # (B*nH,S,hd) bf16
        ctx = ctx.reshape(B, n_heads, S, hd).transpose(0, 2, 1, 3).reshape(B * S, H)

        attn_out = linear(ctx, p["wo"], p["bo"])
        h = add_layernorm(attn_out, h, p["ln1_g"], p["ln1_b"])              # residual + LN
        inter = linear(h, p["w1"], p["b1"], act="gelu", out_dtype=jnp.bfloat16)
        ffn_out = linear(inter, p["w2"], p["b2"])
        h = add_layernorm(ffn_out, h, p["ln2_g"], p["ln2_b"])               # residual + LN

    # classifier: (H, V) weight streamed through the vocab-tiled matmul
    logits = linear(h, params["clf_w"], params["clf_b"])                    # (B*S, V) f32
    if y is not None:
        y_flat = y.reshape(B * S, 1).astype(jnp.int32)
        loss = cross_entropy_mean(logits, y_flat)
        return loss[0, 0]
    else:
        probs = row_softmax(logits)
        return probs.reshape(B, S, -1)


# ----------------------------- demo -----------------------------

if __name__ == "__main__":
    B, S = 2, 8
    HIDDEN, N_HEADS, N_LAYERS, VOCAB, INTER, MAX_POS = 32, 4, 2, 64, 128, 16

    root = jax.random.PRNGKey(0)
    k_params, k_x, k_y = jax.random.split(root, 3)

    params = init_params(k_params, vocab_size=VOCAB, hidden_size=HIDDEN,
                         n_layers=N_LAYERS, intermediate=INTER, max_pos=MAX_POS)

    x = jax.random.randint(k_x, (B, S), 0, VOCAB, dtype=jnp.int32)
    y = jax.random.randint(k_y, (B, S), 0, VOCAB, dtype=jnp.int32)

    infer_fn = jax.jit(lambda p, xx: language_model_forward(p, xx, None, n_heads=N_HEADS))
    train_fn = jax.jit(lambda p, xx, yy: language_model_forward(p, xx, yy, n_heads=N_HEADS))

    # inference branch (y=None): softmax over vocab
    probs = infer_fn(params, x)
    # training branch (y given): mean cross-entropy with tril+content_len attention mask
    loss = train_fn(params, x, y)

    jax.block_until_ready((probs, loss))

    assert probs.shape == (B, S, VOCAB)
    # approx reciprocal in the softmax kernel -> allow small deviation from exact 1.0
    assert bool(jnp.all(jnp.abs(jnp.sum(probs, axis=-1) - 1.0) < 5e-3))
    assert bool(jnp.isfinite(loss))
    print("KERNEL_OK")
</pallas_src>

<mosaic_0001>
module attributes {stable_mosaic.version = 11 : i64} {
  func.func @_ln_kernel(%arg0: i32, %arg1: memref<16x32xf32, #tpu.memory_space<vmem>>, %arg2: memref<1x32xf32, #tpu.memory_space<vmem>>, %arg3: memref<1x32xf32, #tpu.memory_space<vmem>>, %arg4: memref<16x32xf32, #tpu.memory_space<vmem>>) attributes {dimension_semantics = [#tpu.dimension_semantics<parallel>], iteration_bounds = array<i64: 1>, scalar_prefetch = 0 : i64, scratch_operands = 0 : i64, tpu.core_type = #tpu.core_type<tc>, window_params = [{transform_indices = @transform_0, window_bounds = array<i64: 16, 32>}, {pipeline_mode = #tpu.pipeline_mode<synchronous>, transform_indices = @transform_1, window_bounds = array<i64: 1, 32>}, {pipeline_mode = #tpu.pipeline_mode<synchronous>, transform_indices = @transform_2, window_bounds = array<i64: 1, 32>}, {transform_indices = @transform_3, window_bounds = array<i64: 16, 32>}]} {
    %c0 = arith.constant 0 : index
    %c0_0 = arith.constant 0 : index
    %0 = vector.load %arg1[%c0, %c0_0] : memref<16x32xf32, #tpu.memory_space<vmem>>, vector<16x32xf32>
    %cst = arith.constant dense<0.000000e+00> : vector<16xf32>
    %1 = vector.multi_reduction <add>, %0, %cst [1] : vector<16x32xf32> to vector<16xf32>
    %2 = vector.shape_cast %1 : vector<16xf32> to vector<16x1xf32>
    %cst_1 = arith.constant 3.200000e+01 : f32
    %3 = vector.broadcast %cst_1 : f32 to vector<16x1xf32>
    %4 = arith.divf %2, %3 : vector<16x1xf32>
    %5 = vector.broadcast %4 : vector<16x1xf32> to vector<16x32xf32>
    %6 = arith.subf %0, %5 : vector<16x32xf32>
    %7 = arith.mulf %6, %6 : vector<16x32xf32>
    %cst_2 = arith.constant dense<0.000000e+00> : vector<16xf32>
    %8 = vector.multi_reduction <add>, %7, %cst_2 [1] : vector<16x32xf32> to vector<16xf32>
    %9 = vector.shape_cast %8 : vector<16xf32> to vector<16x1xf32>
    %cst_3 = arith.constant 3.200000e+01 : f32
    %10 = vector.broadcast %cst_3 : f32 to vector<16x1xf32>
    %11 = arith.divf %9, %10 : vector<16x1xf32>
    %12 = vector.broadcast %4 : vector<16x1xf32> to vector<16x32xf32>
    %13 = arith.subf %0, %12 : vector<16x32xf32>
    %cst_4 = arith.constant 9.99999996E-13 : f32
    %14 = vector.broadcast %cst_4 : f32 to vector<16x1xf32>
    %15 = arith.addf %11, %14 : vector<16x1xf32>
    %16 = math.rsqrt %15 : vector<16x1xf32>
    %17 = vector.broadcast %16 : vector<16x1xf32> to vector<16x32xf32>
    %18 = arith.mulf %13, %17 : vector<16x32xf32>
    %c0_5 = arith.constant 0 : index
    %c0_6 = arith.constant 0 : index
    %19 = vector.load %arg2[%c0_5, %c0_6] : memref<1x32xf32, #tpu.memory_space<vmem>>, vector<1x32xf32>
    %20 = vector.broadcast %19 : vector<1x32xf32> to vector<16x32xf32>
    %21 = arith.mulf %18, %20 : vector<16x32xf32>
    %c0_7 = arith.constant 0 : index
    %c0_8 = arith.constant 0 : index
    %22 = vector.load %arg3[%c0_7, %c0_8] : memref<1x32xf32, #tpu.memory_space<vmem>>, vector<1x32xf32>
    %23 = vector.broadcast %22 : vector<1x32xf32> to vector<16x32xf32>
    %24 = arith.addf %21, %23 : vector<16x32xf32>
    %c0_9 = arith.constant 0 : index
    %c0_10 = arith.constant 0 : index
    %25 = vector.load %arg4[%c0_9, %c0_10] : memref<16x32xf32, #tpu.memory_space<vmem>>, vector<16x32xf32>
    tpu.vector_store %arg4[%c0_9, %c0_10], %24 {strides = array<i32>} : memref<16x32xf32, #tpu.memory_space<vmem>>, vector<16x32xf32>,
    return
  }
  func.func @transform_0(%arg0: i32) -> (i32, i32) {
    %c0_i32 = arith.constant 0 : i32
    %c0_i32_0 = arith.constant 0 : i32
    return %arg0, %c0_i32 : i32, i32
  }
  func.func @transform_1(%arg0: i32) -> (i32, i32) {
    %c0_i32 = arith.constant 0 : i32
    %c0_i32_0 = arith.constant 0 : i32
    %c0_i32_1 = arith.constant 0 : i32
    return %c0_i32, %c0_i32_0 : i32, i32
  }
  func.func @transform_2(%arg0: i32) -> (i32, i32) {
    %c0_i32 = arith.constant 0 : i32
    %c0_i32_0 = arith.constant 0 : i32
    %c0_i32_1 = arith.constant 0 : i32
    return %c0_i32, %c0_i32_0 : i32, i32
  }
  func.func @transform_3(%arg0: i32) -> (i32, i32) {
    %c0_i32 = arith.constant 0 : i32
    %c0_i32_0 = arith.constant 0 : i32
    return %arg0, %c0_i32 : i32, i32
  }
}

module attributes {stable_mosaic.version = 11 : i64} {
  func.func @_linear_kernel(%arg0: i32, %arg1: i32, %arg2: i32, %arg3: memref<16x32xbf16, #tpu.memory_space<vmem>>, %arg4: memref<32x96xbf16, #tpu.memory_space<vmem>>, %arg5: memref<1x96xf32, #tpu.memory_space<vmem>>, %arg6: memref<16x96xbf16, #tpu.memory_space<vmem>>, %arg7: memref<16x96xf32, #tpu.memory_space<vmem>>) attributes {dimension_semantics = [#tpu.dimension_semantics<parallel>, #tpu.dimension_semantics<parallel>, #tpu.dimension_semantics<arbitrary>], iteration_bounds = array<i64: 1, 1, 1>, scalar_prefetch = 0 : i64, scratch_operands = 1 : i64, tpu.core_type = #tpu.core_type<tc>, window_params = [{transform_indices = @transform_0, window_bounds = array<i64: 16, 32>}, {transform_indices = @transform_1, window_bounds = array<i64: 32, 96>}, {transform_indices = @transform_2, window_bounds = array<i64: 1, 96>}, {transform_indices = @transform_3, window_bounds = array<i64: 16, 96>}]} {
    %c0_i32 = arith.constant 0 : i32
    %0 = arith.cmpi eq, %arg2, %c0_i32 : i32
    %1 = arith.extui %0 : i1 to i32
    %c0_i32_0 = arith.constant 0 : i32
    %2 = arith.cmpi ne, %1, %c0_i32_0 : i32
    scf.if %2 {
      %cst_10 = arith.constant 0.000000e+00 : f32
      %12 = vector.broadcast %cst_10 : f32 to vector<16x96xf32>
      %c0_11 = arith.constant 0 : index
      %c0_12 = arith.constant 0 : index
      %13 = vector.load %arg7[%c0_11, %c0_12] : memref<16x96xf32, #tpu.memory_space<vmem>>, vector<16x96xf32>
      tpu.vector_store %arg7[%c0_11, %c0_12], %12 {strides = array<i32>} : memref<16x96xf32, #tpu.memory_space<vmem>>, vector<16x96xf32>,
    } else {
    }
    %c0 = arith.constant 0 : index
    %c0_1 = arith.constant 0 : index
    %3 = vector.load %arg7[%c0, %c0_1] : memref<16x96xf32, #tpu.memory_space<vmem>>, vector<16x96xf32>
    %c0_2 = arith.constant 0 : index
    %c0_3 = arith.constant 0 : index
    %4 = vector.load %arg3[%c0_2, %c0_3] : memref<16x32xbf16, #tpu.memory_space<vmem>>, vector<16x32xbf16>
    %c0_4 = arith.constant 0 : index
    %c0_5 = arith.constant 0 : index
    %5 = vector.load %arg4[%c0_4, %c0_5] : memref<32x96xbf16, #tpu.memory_space<vmem>>, vector<32x96xbf16>
    %cst = arith.constant dense<0.000000e+00> : vector<16x96xf32>
    %6 = tpu.matmul %4, %5, %cst {dimension_numbers = #tpu.dot_dimension_numbers<[1], [0], [0], [1], [0, 0, 1, 1], [], []>} : vector<16x32xbf16>, vector<32x96xbf16>, vector<16x96xf32> -> vector<16x96xf32>
    %7 = arith.addf %3, %6 : vector<16x96xf32>
    %c0_6 = arith.constant 0 : index
    %c0_7 = arith.constant 0 : index
    %8 = vector.load %arg7[%c0_6, %c0_7] : memref<16x96xf32, #tpu.memory_space<vmem>>, vector<16x96xf32>
    tpu.vector_store %arg7[%c0_6, %c0_7], %7 {strides = array<i32>} : memref<16x96xf32, #tpu.memory_space<vmem>>, vector<16x96xf32>,
    %c0_i32_8 = arith.constant 0 : i32
    %9 = arith.cmpi eq, %arg2, %c0_i32_8 : i32
    %10 = arith.extui %9 : i1 to i32
    %c0_i32_9 = arith.constant 0 : i32
    %11 = arith.cmpi ne, %10, %c0_i32_9 : i32
    scf.if %11 {
      %c0_10 = arith.constant 0 : index
      %c0_11 = arith.constant 0 : index
      %12 = vector.load %arg7[%c0_10, %c0_11] : memref<16x96xf32, #tpu.memory_space<vmem>>, vector<16x96xf32>
      %c0_12 = arith.constant 0 : index
      %c0_13 = arith.constant 0 : index
      %13 = vector.load %arg5[%c0_12, %c0_13] : memref<1x96xf32, #tpu.memory_space<vmem>>, vector<1x96xf32>
      %14 = vector.broadcast %13 : vector<1x96xf32> to vector<16x96xf32>
      %15 = arith.addf %12, %14 : vector<16x96xf32>
      %16 = arith.truncf %15 : vector<16x96xf32> to vector<16x96xbf16>
      %c0_14 = arith.constant 0 : index
      %c0_15 = arith.constant 0 : index
      %17 = vector.load %arg6[%c0_14, %c0_15] : memref<16x96xbf16, #tpu.memory_space<vmem>>, vector<16x96xbf16>
      tpu.vector_store %arg6[%c0_14, %c0_15], %16 {strides = array<i32>} : memref<16x96xbf16, #tpu.memory_space<vmem>>, vector<16x96xbf16>,
    } else {
    }
    return
  }
  func.func @transform_0(%arg0: i32, %arg1: i32, %arg2: i32) -> (i32, i32) {
    %c0_i32 = arith.constant 0 : i32
    return %arg0, %arg2 : i32, i32
  }
  func.func @transform_1(%arg0: i32, %arg1: i32, %arg2: i32) -> (i32, i32) {
    %c0_i32 = arith.constant 0 : i32
    return %arg2, %arg1 : i32, i32
  }
  func.func @transform_2(%arg0: i32, %arg1: i32, %arg2: i32) -> (i32, i32) {
    %c0_i32 = arith.constant 0 : i32
    %c0_i32_0 = arith.constant 0 : i32
    return %c0_i32, %arg1 : i32, i32
  }
  func.func @transform_3(%arg0: i32, %arg1: i32, %arg2: i32) -> (i32, i32) {
    %c0_i32 = arith.constant 0 : i32
    return %arg0, %arg1 : i32, i32
  }
}

module attributes {stable_mosaic.version = 11 : i64} {
  func.func @_flash_attn_kernel(%arg0: i32, %arg1: i32, %arg2: i32, %arg3: memref<1x8x8xbf16, #tpu.memory_space<vmem>>, %arg4: memref<1x8x8xbf16, #tpu.memory_space<vmem>>, %arg5: memref<1x8x8xbf16, #tpu.memory_space<vmem>>, %arg6: memref<1x8x8xbf16, #tpu.memory_space<vmem>>, %arg7: memref<8x1xf32, #tpu.memory_space<vmem>>, %arg8: memref<8x1xf32, #tpu.memory_space<vmem>>, %arg9: memref<8x8xf32, #tpu.memory_space<vmem>>) attributes {dimension_semantics = [#tpu.dimension_semantics<parallel>, #tpu.dimension_semantics<parallel>, #tpu.dimension_semantics<arbitrary>], iteration_bounds = array<i64: 8, 1, 1>, scalar_prefetch = 0 : i64, scratch_operands = 3 : i64, tpu.core_type = #tpu.core_type<tc>, window_params = [{transform_indices = @transform_0, window_bounds = array<i64: 1, 8, 8>}, {transform_indices = @transform_1, window_bounds = array<i64: 1, 8, 8>}, {transform_indices = @transform_2, window_bounds = array<i64: 1, 8, 8>}, {transform_indices = @transform_3, window_bounds = array<i64: 1, 8, 8>}]} {
    %c0_i32 = arith.constant 0 : i32
    %0 = arith.cmpi eq, %arg2, %c0_i32 : i32
    %1 = arith.extui %0 : i1 to i32
    %c0_i32_0 = arith.constant 0 : i32
    %2 = arith.cmpi ne, %1, %c0_i32_0 : i32
    scf.if %2 {
      %cst_27 = arith.constant 0xFF800000 : f32
      %38 = vector.broadcast %cst_27 : f32 to vector<8x1xf32>
      %c0_28 = arith.constant 0 : index
      %c0_29 = arith.constant 0 : index
      %39 = vector.load %arg7[%c0_28, %c0_29] : memref<8x1xf32, #tpu.memory_space<vmem>>, vector<8x1xf32>
      tpu.vector_store %arg7[%c0_28, %c0_29], %38 {strides = array<i32>} : memref<8x1xf32, #tpu.memory_space<vmem>>, vector<8x1xf32>,
      %cst_30 = arith.constant 0.000000e+00 : f32
      %40 = vector.broadcast %cst_30 : f32 to vector<8x1xf32>
      %c0_31 = arith.constant 0 : index
      %c0_32 = arith.constant 0 : index
      %41 = vector.load %arg8[%c0_31, %c0_32] : memref<8x1xf32, #tpu.memory_space<vmem>>, vector<8x1xf32>
      tpu.vector_store %arg8[%c0_31, %c0_32], %40 {strides = array<i32>} : memref<8x1xf32, #tpu.memory_space<vmem>>, vector<8x1xf32>,
      %cst_33 = arith.constant 0.000000e+00 : f32
      %42 = vector.broadcast %cst_33 : f32 to vector<8x8xf32>
      %c0_34 = arith.constant 0 : index
      %c0_35 = arith.constant 0 : index
      %43 = vector.load %arg9[%c0_34, %c0_35] : memref<8x8xf32, #tpu.memory_space<vmem>>, vector<8x8xf32>
      tpu.vector_store %arg9[%c0_34, %c0_35], %42 {strides = array<i32>} : memref<8x8xf32, #tpu.memory_space<vmem>>, vector<8x8xf32>,
    } else {
    }
    %c0 = arith.constant 0 : index
    %c0_1 = arith.constant 0 : index
    %c0_2 = arith.constant 0 : index
    %3 = vector.load %arg3[%c0, %c0_1, %c0_2] : memref<1x8x8xbf16, #tpu.memory_space<vmem>>, vector<1x8x8xbf16>
    %4 = vector.shape_cast %3 : vector<1x8x8xbf16> to vector<8x8xbf16>
    %c0_3 = arith.constant 0 : index
    %c0_4 = arith.constant 0 : index
    %c0_5 = arith.constant 0 : index
    %5 = vector.load %arg4[%c0_3, %c0_4, %c0_5] : memref<1x8x8xbf16, #tpu.memory_space<vmem>>, vector<1x8x8xbf16>
    %6 = vector.shape_cast %5 : vector<1x8x8xbf16> to vector<8x8xbf16>
    %c0_6 = arith.constant 0 : index
    %c0_7 = arith.constant 0 : index
    %c0_8 = arith.constant 0 : index
    %7 = vector.load %arg5[%c0_6, %c0_7, %c0_8] : memref<1x8x8xbf16, #tpu.memory_space<vmem>>, vector<1x8x8xbf16>
    %8 = vector.shape_cast %7 : vector<1x8x8xbf16> to vector<8x8xbf16>
    %cst = arith.constant dense<0.000000e+00> : vector<8x8xf32>
    %9 = tpu.matmul %4, %6, %cst {dimension_numbers = #tpu.dot_dimension_numbers<[1], [1], [0], [0], [0, 0, 1, 0], [], []>} : vector<8x8xbf16>, vector<8x8xbf16>, vector<8x8xf32> -> vector<8x8xf32>
    %cst_9 = arith.constant 0.353553385 : f32
    %10 = vector.broadcast %cst_9 : f32 to vector<8x8xf32>
    %11 = arith.mulf %9, %10 : vector<8x8xf32>
    %c0_10 = arith.constant 0 : index
    %c0_11 = arith.constant 0 : index
    %12 = vector.load %arg7[%c0_10, %c0_11] : memref<8x1xf32, #tpu.memory_space<vmem>>, vector<8x1xf32>
    %cst_12 = arith.constant dense<0xFF800000> : vector<8xf32>
    %13 = vector.multi_reduction <maximumf>, %11, %cst_12 [1] : vector<8x8xf32> to vector<8xf32>
    %14 = vector.shape_cast %13 : vector<8xf32> to vector<8x1xf32>
    %15 = arith.maximumf %12, %14 : vector<8x1xf32>
    %16 = arith.subf %12, %15 : vector<8x1xf32>
    %17 = math.exp %16 : vector<8x1xf32>
    %18 = vector.broadcast %15 : vector<8x1xf32> to vector<8x8xf32>
    %19 = arith.subf %11, %18 : vector<8x8xf32>
    %20 = math.exp %19 : vector<8x8xf32>
    %c0_13 = arith.constant 0 : index
    %c0_14 = arith.constant 0 : index
    %21 = vector.load %arg8[%c0_13, %c0_14] : memref<8x1xf32, #tpu.memory_space<vmem>>, vector<8x1xf32>
    %22 = arith.mulf %17, %21 : vector<8x1xf32>
    %cst_15 = arith.constant dense<0.000000e+00> : vector<8xf32>
    %23 = vector.multi_reduction <add>, %20, %cst_15 [1] : vector<8x8xf32> to vector<8xf32>
    %24 = vector.shape_cast %23 : vector<8xf32> to vector<8x1xf32>
    %25 = arith.addf %22, %24 : vector<8x1xf32>
    %c0_16 = arith.constant 0 : index
    %c0_17 = arith.constant 0 : index
    %26 = vector.load %arg8[%c0_16, %c0_17] : memref<8x1xf32, #tpu.memory_space<vmem>>, vector<8x1xf32>
    tpu.vector_store %arg8[%c0_16, %c0_17], %25 {strides = array<i32>} : memref<8x1xf32, #tpu.memory_space<vmem>>, vector<8x1xf32>,
    %c0_18 = arith.constant 0 : index
    %c0_19 = arith.constant 0 : index
    %27 = vector.load %arg9[%c0_18, %c0_19] : memref<8x8xf32, #tpu.memory_space<vmem>>, vector<8x8xf32>
    %28 = vector.broadcast %17 : vector<8x1xf32> to vector<8x8xf32>
    %29 = arith.mulf %28, %27 : vector<8x8xf32>
    %30 = arith.truncf %20 : vector<8x8xf32> to vector<8x8xbf16>
    %cst_20 = arith.constant dense<0.000000e+00> : vector<8x8xf32>
    %31 = tpu.matmul %30, %8, %cst_20 {dimension_numbers = #tpu.dot_dimension_numbers<[1], [0], [0], [1], [0, 0, 1, 1], [], []>} : vector<8x8xbf16>, vector<8x8xbf16>, vector<8x8xf32> -> vector<8x8xf32>
    %32 = arith.addf %29, %31 : vector<8x8xf32>
    %c0_21 = arith.constant 0 : index
    %c0_22 = arith.constant 0 : index
    %33 = vector.load %arg9[%c0_21, %c0_22] : memref<8x8xf32, #tpu.memory_space<vmem>>, vector<8x8xf32>
    tpu.vector_store %arg9[%c0_21, %c0_22], %32 {strides = array<i32>} : memref<8x8xf32, #tpu.memory_space<vmem>>, vector<8x8xf32>,
    %c0_23 = arith.constant 0 : index
    %c0_24 = arith.constant 0 : index
    %34 = vector.load %arg7[%c0_23, %c0_24] : memref<8x1xf32, #tpu.memory_space<vmem>>, vector<8x1xf32>
    tpu.vector_store %arg7[%c0_23, %c0_24], %15 {strides = array<i32>} : memref<8x1xf32, #tpu.memory_space<vmem>>, vector<8x1xf32>,
    %c0_i32_25 = arith.constant 0 : i32
    %35 = arith.cmpi eq, %arg2, %c0_i32_25 : i32
    %36 = arith.extui %35 : i1 to i32
    %c0_i32_26 = arith.constant 0 : i32
    %37 = arith.cmpi ne, %36, %c0_i32_26 : i32
    scf.if %37 {
      %c0_27 = arith.constant 0 : index
      %c0_28 = arith.constant 0 : index
      %38 = vector.load %arg9[%c0_27, %c0_28] : memref<8x8xf32, #tpu.memory_space<vmem>>, vector<8x8xf32>
      %c0_29 = arith.constant 0 : index
      %c0_30 = arith.constant 0 : index
      %39 = vector.load %arg8[%c0_29, %c0_30] : memref<8x1xf32, #tpu.memory_space<vmem>>, vector<8x1xf32>
      %40 = tpu.reciprocal %39 {approx = true} : vector<8x1xf32> -> vector<8x1xf32>
      %41 = vector.broadcast %40 : vector<8x1xf32> to vector<8x8xf32>
      %42 = arith.mulf %38, %41 : vector<8x8xf32>
      %43 = arith.truncf %42 : vector<8x8xf32> to vector<8x8xbf16>
      %c0_31 = arith.constant 0 : index
      %c0_32 = arith.constant 0 : index
      %c0_33 = arith.constant 0 : index
      %44 = vector.load %arg6[%c0_31, %c0_32, %c0_33] : memref<1x8x8xbf16, #tpu.memory_space<vmem>>, vector<1x8x8xbf16>
      %45 = vector.shape_cast %44 : vector<1x8x8xbf16> to vector<8x8xbf16>
      %46 = vector.shape_cast %43 : vector<8x8xbf16> to vector<1x8x8xbf16>
      tpu.vector_store %arg6[%c0_31, %c0_32, %c0_33], %46 {strides = array<i32>} : memref<1x8x8xbf16, #tpu.memory_space<vmem>>, vector<1x8x8xbf16>,
    } else {
    }
    return
  }
  func.func @transform_0(%arg0: i32, %arg1: i32, %arg2: i32) -> (i32, i32, i32) {
    %c0_i32 = arith.constant 0 : i32
    %c0_i32_0 = arith.constant 0 : i32
    return %arg0, %arg1, %c0_i32 : i32, i32, i32
  }
  func.func @transform_1(%arg0: i32, %arg1: i32, %arg2: i32) -> (i32, i32, i32) {
    %c0_i32 = arith.constant 0 : i32
    %c0_i32_0 = arith.constant 0 : i32
    return %arg0, %arg2, %c0_i32 : i32, i32, i32
  }
  func.func @transform_2(%arg0: i32, %arg1: i32, %arg2: i32) -> (i32, i32, i32) {
    %c0_i32 = arith.constant 0 : i32
    %c0_i32_0 = arith.constant 0 : i32
    return %arg0, %arg2, %c0_i32 : i32, i32, i32
  }
  func.func @transform_3(%arg0: i32, %arg1: i32, %arg2: i32) -> (i32, i32, i32) {
    %c0_i32 = arith.constant 0 : i32
    %c0_i32_0 = arith.constant 0 : i32
    return %arg0, %arg1, %c0_i32 : i32, i32, i32
  }
}

module attributes {stable_mosaic.version = 11 : i64} {
  func.func @_linear_kernel(%arg0: i32, %arg1: i32, %arg2: i32, %arg3: memref<16x32xbf16, #tpu.memory_space<vmem>>, %arg4: memref<32x32xbf16, #tpu.memory_space<vmem>>, %arg5: memref<1x32xf32, #tpu.memory_space<vmem>>, %arg6: memref<16x32xf32, #tpu.memory_space<vmem>>, %arg7: memref<16x32xf32, #tpu.memory_space<vmem>>) attributes {dimension_semantics = [#tpu.dimension_semantics<parallel>, #tpu.dimension_semantics<parallel>, #tpu.dimension_semantics<arbitrary>], iteration_bounds = array<i64: 1, 1, 1>, scalar_prefetch = 0 : i64, scratch_operands = 1 : i64, tpu.core_type = #tpu.core_type<tc>, window_params = [{transform_indices = @transform_0, window_bounds = array<i64: 16, 32>}, {transform_indices = @transform_1, window_bounds = array<i64: 32, 32>}, {transform_indices = @transform_2, window_bounds = array<i64: 1, 32>}, {transform_indices = @transform_3, window_bounds = array<i64: 16, 32>}]} {
    %c0_i32 = arith.constant 0 : i32
    %0 = arith.cmpi eq, %arg2, %c0_i32 : i32
    %1 = arith.extui %0 : i1 to i32
    %c0_i32_0 = arith.constant 0 : i32
    %2 = arith.cmpi ne, %1, %c0_i32_0 : i32
    scf.if %2 {
      %cst_10 = arith.constant 0.000000e+00 : f32
      %12 = vector.broadcast %cst_10 : f32 to vector<16x32xf32>
      %c0_11 = arith.constant 0 : index
      %c0_12 = arith.constant 0 : index
      %13 = vector.load %arg7[%c0_11, %c0_12] : memref<16x32xf32, #tpu.memory_space<vmem>>, vector<16x32xf32>
      tpu.vector_store %arg7[%c0_11, %c0_12], %12 {strides = array<i32>} : memref<16x32xf32, #tpu.memory_space<vmem>>, vector<16x32xf32>,
    } else {
    }
    %c0 = arith.constant 0 : index
    %c0_1 = arith.constant 0 : index
    %3 = vector.load %arg7[%c0, %c0_1] : memref<16x32xf32, #tpu.memory_space<vmem>>, vector<16x32xf32>
    %c0_2 = arith.constant 0 : index
    %c0_3 = arith.constant 0 : index
    %4 = vector.load %arg3[%c0_2, %c0_3] : memref<16x32xbf16, #tpu.memory_space<vmem>>, vector<16x32xbf16>
    %c0_4 = arith.constant 0 : index
    %c0_5 = arith.constant 0 : index
    %5 = vector.load %arg4[%c0_4, %c0_5] : memref<32x32xbf16, #tpu.memory_space<vmem>>, vector<32x32xbf16>
    %cst = arith.constant dense<0.000000e+00> : vector<16x32xf32>
    %6 = tpu.matmul %4, %5, %cst {dimension_numbers = #tpu.dot_dimension_numbers<[1], [0], [0], [1], [0, 0, 1, 1], [], []>} : vector<16x32xbf16>, vector<32x32xbf16>, vector<16x32xf32> -> vector<16x32xf32>
    %7 = arith.addf %3, %6 : vector<16x32xf32>
    %c0_6 = arith.constant 0 : index
    %c0_7 = arith.constant 0 : index
    %8 = vector.load %arg7[%c0_6, %c0_7] : memref<16x32xf32, #tpu.memory_space<vmem>>, vector<16x32xf32>
    tpu.vector_store %arg7[%c0_6, %c0_7], %7 {strides = array<i32>} : memref<16x32xf32, #tpu.memory_space<vmem>>, vector<16x32xf32>,
    %c0_i32_8 = arith.constant 0 : i32
    %9 = arith.cmpi eq, %arg2, %c0_i32_8 : i32
    %10 = arith.extui %9 : i1 to i32
    %c0_i32_9 = arith.constant 0 : i32
    %11 = arith.cmpi ne, %10, %c0_i32_9 : i32
    scf.if %11 {
      %c0_10 = arith.constant 0 : index
      %c0_11 = arith.constant 0 : index
      %12 = vector.load %arg7[%c0_10, %c0_11] : memref<16x32xf32, #tpu.memory_space<vmem>>, vector<16x32xf32>
      %c0_12 = arith.constant 0 : index
      %c0_13 = arith.constant 0 : index
      %13 = vector.load %arg5[%c0_12, %c0_13] : memref<1x32xf32, #tpu.memory_space<vmem>>, vector<1x32xf32>
      %14 = vector.broadcast %13 : vector<1x32xf32> to vector<16x32xf32>
      %15 = arith.addf %12, %14 : vector<16x32xf32>
      %c0_14 = arith.constant 0 : index
      %c0_15 = arith.constant 0 : index
      %16 = vector.load %arg6[%c0_14, %c0_15] : memref<16x32xf32, #tpu.memory_space<vmem>>, vector<16x32xf32>
      tpu.vector_store %arg6[%c0_14, %c0_15], %15 {strides = array<i32>} : memref<16x32xf32, #tpu.memory_space<vmem>>, vector<16x32xf32>,
    } else {
    }
    return
  }
  func.func @transform_0(%arg0: i32, %arg1: i32, %arg2: i32) -> (i32, i32) {
    %c0_i32 = arith.constant 0 : i32
    return %arg0, %arg2 : i32, i32
  }
  func.func @transform_1(%arg0: i32, %arg1: i32, %arg2: i32) -> (i32, i32) {
    %c0_i32 = arith.constant 0 : i32
    return %arg2, %arg1 : i32, i32
  }
  func.func @transform_2(%arg0: i32, %arg1: i32, %arg2: i32) -> (i32, i32) {
    %c0_i32 = arith.constant 0 : i32
    %c0_i32_0 = arith.constant 0 : i32
    return %c0_i32, %arg1 : i32, i32
  }
  func.func @transform_3(%arg0: i32, %arg1: i32, %arg2: i32) -> (i32, i32) {
    %c0_i32 = arith.constant 0 : i32
    return %arg0, %arg1 : i32, i32
  }
}

module attributes {stable_mosaic.version = 11 : i64} {
  func.func @_linear_kernel(%arg0: i32, %arg1: i32, %arg2: i32, %arg3: memref<16x32xbf16, #tpu.memory_space<vmem>>, %arg4: memref<32x128xbf16, #tpu.memory_space<vmem>>, %arg5: memref<1x128xf32, #tpu.memory_space<vmem>>, %arg6: memref<16x128xbf16, #tpu.memory_space<vmem>>, %arg7: memref<16x128xf32, #tpu.memory_space<vmem>>) attributes {dimension_semantics = [#tpu.dimension_semantics<parallel>, #tpu.dimension_semantics<parallel>, #tpu.dimension_semantics<arbitrary>], iteration_bounds = array<i64: 1, 1, 1>, scalar_prefetch = 0 : i64, scratch_operands = 1 : i64, tpu.core_type = #tpu.core_type<tc>, window_params = [{transform_indices = @transform_0, window_bounds = array<i64: 16, 32>}, {transform_indices = @transform_1, window_bounds = array<i64: 32, 128>}, {transform_indices = @transform_2, window_bounds = array<i64: 1, 128>}, {transform_indices = @transform_3, window_bounds = array<i64: 16, 128>}]} {
    %c0_i32 = arith.constant 0 : i32
    %0 = arith.cmpi eq, %arg2, %c0_i32 : i32
    %1 = arith.extui %0 : i1 to i32
    %c0_i32_0 = arith.constant 0 : i32
    %2 = arith.cmpi ne, %1, %c0_i32_0 : i32
    scf.if %2 {
      %cst_10 = arith.constant 0.000000e+00 : f32
      %12 = vector.broadcast %cst_10 : f32 to vector<16x128xf32>
      %c0_11 = arith.constant 0 : index
      %c0_12 = arith.constant 0 : index
      %13 = vector.load %arg7[%c0_11, %c0_12] : memref<16x128xf32, #tpu.memory_space<vmem>>, vector<16x128xf32>
      tpu.vector_store %arg7[%c0_11, %c0_12], %12 {strides = array<i32>} : memref<16x128xf32, #tpu.memory_space<vmem>>, vector<16x128xf32>,
    } else {
    }
    %c0 = arith.constant 0 : index
    %c0_1 = arith.constant 0 : index
    %3 = vector.load %arg7[%c0, %c0_1] : memref<16x128xf32, #tpu.memory_space<vmem>>, vector<16x128xf32>
    %c0_2 = arith.constant 0 : index
    %c0_3 = arith.constant 0 : index
    %4 = vector.load %arg3[%c0_2, %c0_3] : memref<16x32xbf16, #tpu.memory_space<vmem>>, vector<16x32xbf16>
    %c0_4 = arith.constant 0 : index
    %c0_5 = arith.constant 0 : index
    %5 = vector.load %arg4[%c0_4, %c0_5] : memref<32x128xbf16, #tpu.memory_space<vmem>>, vector<32x128xbf16>
    %cst = arith.constant dense<0.000000e+00> : vector<16x128xf32>
    %6 = tpu.matmul %4, %5, %cst {dimension_numbers = #tpu.dot_dimension_numbers<[1], [0], [0], [1], [0, 0, 1, 1], [], []>} : vector<16x32xbf16>, vector<32x128xbf16>, vector<16x128xf32> -> vector<16x128xf32>
    %7 = arith.addf %3, %6 : vector<16x128xf32>
    %c0_6 = arith.constant 0 : index
    %c0_7 = arith.constant 0 : index
    %8 = vector.load %arg7[%c0_6, %c0_7] : memref<16x128xf32, #tpu.memory_space<vmem>>, vector<16x128xf32>
    tpu.vector_store %arg7[%c0_6, %c0_7], %7 {strides = array<i32>} : memref<16x128xf32, #tpu.memory_space<vmem>>, vector<16x128xf32>,
    %c0_i32_8 = arith.constant 0 : i32
    %9 = arith.cmpi eq, %arg2, %c0_i32_8 : i32
    %10 = arith.extui %9 : i1 to i32
    %c0_i32_9 = arith.constant 0 : i32
    %11 = arith.cmpi ne, %10, %c0_i32_9 : i32
    scf.if %11 {
      %c0_10 = arith.constant 0 : index
      %c0_11 = arith.constant 0 : index
      %12 = vector.load %arg7[%c0_10, %c0_11] : memref<16x128xf32, #tpu.memory_space<vmem>>, vector<16x128xf32>
      %c0_12 = arith.constant 0 : index
      %c0_13 = arith.constant 0 : index
      %13 = vector.load %arg5[%c0_12, %c0_13] : memref<1x128xf32, #tpu.memory_space<vmem>>, vector<1x128xf32>
      %14 = vector.broadcast %13 : vector<1x128xf32> to vector<16x128xf32>
      %15 = arith.addf %12, %14 : vector<16x128xf32>
      %cst_14 = arith.constant 5.000000e-01 : f32
      %16 = vector.broadcast %cst_14 : f32 to vector<16x128xf32>
      %17 = arith.mulf %16, %15 : vector<16x128xf32>
      %cst_15 = arith.constant 0.707106769 : f32
      %18 = vector.broadcast %cst_15 : f32 to vector<16x128xf32>
      %19 = arith.mulf %15, %18 : vector<16x128xf32>
      %20 = math.erf %19 : vector<16x128xf32>
      %cst_16 = arith.constant 1.000000e+00 : f32
      %21 = vector.broadcast %cst_16 : f32 to vector<16x128xf32>
      %22 = arith.addf %21, %20 : vector<16x128xf32>
      %23 = arith.mulf %17, %22 : vector<16x128xf32>
      %24 = arith.truncf %23 : vector<16x128xf32> to vector<16x128xbf16>
      %c0_17 = arith.constant 0 : index
      %c0_18 = arith.constant 0 : index
      %25 = vector.load %arg6[%c0_17, %c0_18] : memref<16x128xbf16, #tpu.memory_space<vmem>>, vector<16x128xbf16>
      tpu.vector_store %arg6[%c0_17, %c0_18], %24 {strides = array<i32>} : memref<16x128xbf16, #tpu.memory_space<vmem>>, vector<16x128xbf16>,
    } else {
    }
    return
  }
  func.func @transform_0(%arg0: i32, %arg1: i32, %arg2: i32) -> (i32, i32) {
    %c0_i32 = arith.constant 0 : i32
    return %arg0, %arg2 : i32, i32
  }
  func.func @transform_1(%arg0: i32, %arg1: i32, %arg2: i32) -> (i32, i32) {
    %c0_i32 = arith.constant 0 : i32
    return %arg2, %arg1 : i32, i32
  }
  func.func @transform_2(%arg0: i32, %arg1: i32, %arg2: i32) -> (i32, i32) {
    %c0_i32 = arith.constant 0 : i32
    %c0_i32_0 = arith.constant 0 : i32
    return %c0_i32, %arg1 : i32, i32
  }
  func.func @transform_3(%arg0: i32, %arg1: i32, %arg2: i32) -> (i32, i32) {
    %c0_i32 = arith.constant 0 : i32
    return %arg0, %arg1 : i32, i32
  }
}

module attributes {stable_mosaic.version = 11 : i64} {
  func.func @_add_ln_kernel(%arg0: i32, %arg1: memref<16x32xf32, #tpu.memory_space<vmem>>, %arg2: memref<16x32xf32, #tpu.memory_space<vmem>>, %arg3: memref<1x32xf32, #tpu.memory_space<vmem>>, %arg4: memref<1x32xf32, #tpu.memory_space<vmem>>, %arg5: memref<16x32xf32, #tpu.memory_space<vmem>>) attributes {dimension_semantics = [#tpu.dimension_semantics<parallel>], iteration_bounds = array<i64: 1>, scalar_prefetch = 0 : i64, scratch_operands = 0 : i64, tpu.core_type = #tpu.core_type<tc>, window_params = [{transform_indices = @transform_0, window_bounds = array<i64: 16, 32>}, {transform_indices = @transform_1, window_bounds = array<i64: 16, 32>}, {pipeline_mode = #tpu.pipeline_mode<synchronous>, transform_indices = @transform_2, window_bounds = array<i64: 1, 32>}, {pipeline_mode = #tpu.pipeline_mode<synchronous>, transform_indices = @transform_3, window_bounds = array<i64: 1, 32>}, {transform_indices = @transform_4, window_bounds = array<i64: 16, 32>}]} {
    %c0 = arith.constant 0 : index
    %c0_0 = arith.constant 0 : index
    %0 = vector.load %arg1[%c0, %c0_0] : memref<16x32xf32, #tpu.memory_space<vmem>>, vector<16x32xf32>
    %c0_1 = arith.constant 0 : index
    %c0_2 = arith.constant 0 : index
    %1 = vector.load %arg2[%c0_1, %c0_2] : memref<16x32xf32, #tpu.memory_space<vmem>>, vector<16x32xf32>
    %2 = arith.addf %0, %1 : vector<16x32xf32>
    %cst = arith.constant dense<0.000000e+00> : vector<16xf32>
    %3 = vector.multi_reduction <add>, %2, %cst [1] : vector<16x32xf32> to vector<16xf32>
    %4 = vector.shape_cast %3 : vector<16xf32> to vector<16x1xf32>
    %cst_3 = arith.constant 3.200000e+01 : f32
    %5 = vector.broadcast %cst_3 : f32 to vector<16x1xf32>
    %6 = arith.divf %4, %5 : vector<16x1xf32>
    %7 = vector.broadcast %6 : vector<16x1xf32> to vector<16x32xf32>
    %8 = arith.subf %2, %7 : vector<16x32xf32>
    %9 = arith.mulf %8, %8 : vector<16x32xf32>
    %cst_4 = arith.constant dense<0.000000e+00> : vector<16xf32>
    %10 = vector.multi_reduction <add>, %9, %cst_4 [1] : vector<16x32xf32> to vector<16xf32>
    %11 = vector.shape_cast %10 : vector<16xf32> to vector<16x1xf32>
    %cst_5 = arith.constant 3.200000e+01 : f32
    %12 = vector.broadcast %cst_5 : f32 to vector<16x1xf32>
    %13 = arith.divf %11, %12 : vector<16x1xf32>
    %14 = vector.broadcast %6 : vector<16x1xf32> to vector<16x32xf32>
    %15 = arith.subf %2, %14 : vector<16x32xf32>
    %cst_6 = arith.constant 9.99999996E-13 : f32
    %16 = vector.broadcast %cst_6 : f32 to vector<16x1xf32>
    %17 = arith.addf %13, %16 : vector<16x1xf32>
    %18 = math.rsqrt %17 : vector<16x1xf32>
    %19 = vector.broadcast %18 : vector<16x1xf32> to vector<16x32xf32>
    %20 = arith.mulf %15, %19 : vector<16x32xf32>
    %c0_7 = arith.constant 0 : index
    %c0_8 = arith.constant 0 : index
    %21 = vector.load %arg3[%c0_7, %c0_8] : memref<1x32xf32, #tpu.memory_space<vmem>>, vector<1x32xf32>
    %22 = vector.broadcast %21 : vector<1x32xf32> to vector<16x32xf32>
    %23 = arith.mulf %20, %22 : vector<16x32xf32>
    %c0_9 = arith.constant 0 : index
    %c0_10 = arith.constant 0 : index
    %24 = vector.load %arg4[%c0_9, %c0_10] : memref<1x32xf32, #tpu.memory_space<vmem>>, vector<1x32xf32>
    %25 = vector.broadcast %24 : vector<1x32xf32> to vector<16x32xf32>
    %26 = arith.addf %23, %25 : vector<16x32xf32>
    %c0_11 = arith.constant 0 : index
    %c0_12 = arith.constant 0 : index
    %27 = vector.load %arg5[%c0_11, %c0_12] : memref<16x32xf32, #tpu.memory_space<vmem>>, vector<16x32xf32>
    tpu.vector_store %arg5[%c0_11, %c0_12], %26 {strides = array<i32>} : memref<16x32xf32, #tpu.memory_space<vmem>>, vector<16x32xf32>,
    return
  }
  func.func @transform_0(%arg0: i32) -> (i32, i32) {
    %c0_i32 = arith.constant 0 : i32
    %c0_i32_0 = arith.constant 0 : i32
    return %arg0, %c0_i32 : i32, i32
  }
  func.func @transform_1(%arg0: i32) -> (i32, i32) {
    %c0_i32 = arith.constant 0 : i32
    %c0_i32_0 = arith.constant 0 : i32
    return %arg0, %c0_i32 : i32, i32
  }
  func.func @transform_2(%arg0: i32) -> (i32, i32) {
    %c0_i32 = arith.constant 0 : i32
    %c0_i32_0 = arith.constant 0 : i32
    %c0_i32_1 = arith.constant 0 : i32
    return %c0_i32, %c0_i32_0 : i32, i32
  }
  func.func @transform_3(%arg0: i32) -> (i32, i32) {
    %c0_i32 = arith.constant 0 : i32
    %c0_i32_0 = arith.constant 0 : i32
    %c0_i32_1 = arith.constant 0 : i32
    return %c0_i32, %c0_i32_0 : i32, i32
  }
  func.func @transform_4(%arg0: i32) -> (i32, i32) {
    %c0_i32 = arith.constant 0 : i32
    %c0_i32_0 = arith.constant 0 : i32
    return %arg0, %c0_i32 : i32, i32
  }
}

module attributes {stable_mosaic.version = 11 : i64} {
  func.func @_linear_kernel(%arg0: i32, %arg1: i32, %arg2: i32, %arg3: memref<16x128xbf16, #tpu.memory_space<vmem>>, %arg4: memref<128x32xbf16, #tpu.memory_space<vmem>>, %arg5: memref<1x32xf32, #tpu.memory_space<vmem>>, %arg6: memref<16x32xf32, #tpu.memory_space<vmem>>, %arg7: memref<16x32xf32, #tpu.memory_space<vmem>>) attributes {dimension_semantics = [#tpu.dimension_semantics<parallel>, #tpu.dimension_semantics<parallel>, #tpu.dimension_semantics<arbitrary>], iteration_bounds = array<i64: 1, 1, 1>, scalar_prefetch = 0 : i64, scratch_operands = 1 : i64, tpu.core_type = #tpu.core_type<tc>, window_params = [{transform_indices = @transform_0, window_bounds = array<i64: 16, 128>}, {transform_indices = @transform_1, window_bounds = array<i64: 128, 32>}, {transform_indices = @transform_2, window_bounds = array<i64: 1, 32>}, {transform_indices = @transform_3, window_bounds = array<i64: 16, 32>}]} {
    %c0_i32 = arith.constant 0 : i32
    %0 = arith.cmpi eq, %arg2, %c0_i32 : i32
    %1 = arith.extui %0 : i1 to i32
    %c0_i32_0 = arith.constant 0 : i32
    %2 = arith.cmpi ne, %1, %c0_i32_0 : i32
    scf.if %2 {
      %cst_10 = arith.constant 0.000000e+00 : f32
      %12 = vector.broadcast %cst_10 : f32 to vector<16x32xf32>
      %c0_11 = arith.constant 0 : index
      %c0_12 = arith.constant 0 : index
      %13 = vector.load %arg7[%c0_11, %c0_12] : memref<16x32xf32, #tpu.memory_space<vmem>>, vector<16x32xf32>
      tpu.vector_store %arg7[%c0_11, %c0_12], %12 {strides = array<i32>} : memref<16x32xf32, #tpu.memory_space<vmem>>, vector<16x32xf32>,
    } else {
    }
    %c0 = arith.constant 0 : index
    %c0_1 = arith.constant 0 : index
    %3 = vector.load %arg7[%c0, %c0_1] : memref<16x32xf32, #tpu.memory_space<vmem>>, vector<16x32xf32>
    %c0_2 = arith.constant 0 : index
    %c0_3 = arith.constant 0 : index
    %4 = vector.load %arg3[%c0_2, %c0_3] : memref<16x128xbf16, #tpu.memory_space<vmem>>, vector<16x128xbf16>
    %c0_4 = arith.constant 0 : index
    %c0_5 = arith.constant 0 : index
    %5 = vector.load %arg4[%c0_4, %c0_5] : memref<128x32xbf16, #tpu.memory_space<vmem>>, vector<128x32xbf16>
    %cst = arith.constant dense<0.000000e+00> : vector<16x32xf32>
    %6 = tpu.matmul %4, %5, %cst {dimension_numbers = #tpu.dot_dimension_numbers<[1], [0], [0], [1], [0, 0, 1, 1], [], []>} : vector<16x128xbf16>, vector<128x32xbf16>, vector<16x32xf32> -> vector<16x32xf32>
    %7 = arith.addf %3, %6 : vector<16x32xf32>
    %c0_6 = arith.constant 0 : index
    %c0_7 = arith.constant 0 : index
    %8 = vector.load %arg7[%c0_6, %c0_7] : memref<16x32xf32, #tpu.memory_space<vmem>>, vector<16x32xf32>
    tpu.vector_store %arg7[%c0_6, %c0_7], %7 {strides = array<i32>} : memref<16x32xf32, #tpu.memory_space<vmem>>, vector<16x32xf32>,
    %c0_i32_8 = arith.constant 0 : i32
    %9 = arith.cmpi eq, %arg2, %c0_i32_8 : i32
    %10 = arith.extui %9 : i1 to i32
    %c0_i32_9 = arith.constant 0 : i32
    %11 = arith.cmpi ne, %10, %c0_i32_9 : i32
    scf.if %11 {
      %c0_10 = arith.constant 0 : index
      %c0_11 = arith.constant 0 : index
      %12 = vector.load %arg7[%c0_10, %c0_11] : memref<16x32xf32, #tpu.memory_space<vmem>>, vector<16x32xf32>
      %c0_12 = arith.constant 0 : index
      %c0_13 = arith.constant 0 : index
      %13 = vector.load %arg5[%c0_12, %c0_13] : memref<1x32xf32, #tpu.memory_space<vmem>>, vector<1x32xf32>
      %14 = vector.broadcast %13 : vector<1x32xf32> to vector<16x32xf32>
      %15 = arith.addf %12, %14 : vector<16x32xf32>
      %c0_14 = arith.constant 0 : index
      %c0_15 = arith.constant 0 : index
      %16 = vector.load %arg6[%c0_14, %c0_15] : memref<16x32xf32, #tpu.memory_space<vmem>>, vector<16x32xf32>
      tpu.vector_store %arg6[%c0_14, %c0_15], %15 {strides = array<i32>} : memref<16x32xf32, #tpu.memory_space<vmem>>, vector<16x32xf32>,
    } else {
    }
    return
  }
  func.func @transform_0(%arg0: i32, %arg1: i32, %arg2: i32) -> (i32, i32) {
    %c0_i32 = arith.constant 0 : i32
    return %arg0, %arg2 : i32, i32
  }
  func.func @transform_1(%arg0: i32, %arg1: i32, %arg2: i32) -> (i32, i32) {
    %c0_i32 = arith.constant 0 : i32
    return %arg2, %arg1 : i32, i32
  }
  func.func @transform_2(%arg0: i32, %arg1: i32, %arg2: i32) -> (i32, i32) {
    %c0_i32 = arith.constant 0 : i32
    %c0_i32_0 = arith.constant 0 : i32
    return %c0_i32, %arg1 : i32, i32
  }
  func.func @transform_3(%arg0: i32, %arg1: i32, %arg2: i32) -> (i32, i32) {
    %c0_i32 = arith.constant 0 : i32
    return %arg0, %arg1 : i32, i32
  }
}

module attributes {stable_mosaic.version = 11 : i64} {
  func.func @_linear_kernel(%arg0: i32, %arg1: i32, %arg2: i32, %arg3: memref<16x32xbf16, #tpu.memory_space<vmem>>, %arg4: memref<32x64xbf16, #tpu.memory_space<vmem>>, %arg5: memref<1x64xf32, #tpu.memory_space<vmem>>, %arg6: memref<16x64xf32, #tpu.memory_space<vmem>>, %arg7: memref<16x64xf32, #tpu.memory_space<vmem>>) attributes {dimension_semantics = [#tpu.dimension_semantics<parallel>, #tpu.dimension_semantics<parallel>, #tpu.dimension_semantics<arbitrary>], iteration_bounds = array<i64: 1, 1, 1>, scalar_prefetch = 0 : i64, scratch_operands = 1 : i64, tpu.core_type = #tpu.core_type<tc>, window_params = [{transform_indices = @transform_0, window_bounds = array<i64: 16, 32>}, {transform_indices = @transform_1, window_bounds = array<i64: 32, 64>}, {transform_indices = @transform_2, window_bounds = array<i64: 1, 64>}, {transform_indices = @transform_3, window_bounds = array<i64: 16, 64>}]} {
    %c0_i32 = arith.constant 0 : i32
    %0 = arith.cmpi eq, %arg2, %c0_i32 : i32
    %1 = arith.extui %0 : i1 to i32
    %c0_i32_0 = arith.constant 0 : i32
    %2 = arith.cmpi ne, %1, %c0_i32_0 : i32
    scf.if %2 {
      %cst_10 = arith.constant 0.000000e+00 : f32
      %12 = vector.broadcast %cst_10 : f32 to vector<16x64xf32>
      %c0_11 = arith.constant 0 : index
      %c0_12 = arith.constant 0 : index
      %13 = vector.load %arg7[%c0_11, %c0_12] : memref<16x64xf32, #tpu.memory_space<vmem>>, vector<16x64xf32>
      tpu.vector_store %arg7[%c0_11, %c0_12], %12 {strides = array<i32>} : memref<16x64xf32, #tpu.memory_space<vmem>>, vector<16x64xf32>,
    } else {
    }
    %c0 = arith.constant 0 : index
    %c0_1 = arith.constant 0 : index
    %3 = vector.load %arg7[%c0, %c0_1] : memref<16x64xf32, #tpu.memory_space<vmem>>, vector<16x64xf32>
    %c0_2 = arith.constant 0 : index
    %c0_3 = arith.constant 0 : index
    %4 = vector.load %arg3[%c0_2, %c0_3] : memref<16x32xbf16, #tpu.memory_space<vmem>>, vector<16x32xbf16>
    %c0_4 = arith.constant 0 : index
    %c0_5 = arith.constant 0 : index
    %5 = vector.load %arg4[%c0_4, %c0_5] : memref<32x64xbf16, #tpu.memory_space<vmem>>, vector<32x64xbf16>
    %cst = arith.constant dense<0.000000e+00> : vector<16x64xf32>
    %6 = tpu.matmul %4, %5, %cst {dimension_numbers = #tpu.dot_dimension_numbers<[1], [0], [0], [1], [0, 0, 1, 1], [], []>} : vector<16x32xbf16>, vector<32x64xbf16>, vector<16x64xf32> -> vector<16x64xf32>
    %7 = arith.addf %3, %6 : vector<16x64xf32>
    %c0_6 = arith.constant 0 : index
    %c0_7 = arith.constant 0 : index
    %8 = vector.load %arg7[%c0_6, %c0_7] : memref<16x64xf32, #tpu.memory_space<vmem>>, vector<16x64xf32>
    tpu.vector_store %arg7[%c0_6, %c0_7], %7 {strides = array<i32>} : memref<16x64xf32, #tpu.memory_space<vmem>>, vector<16x64xf32>,
    %c0_i32_8 = arith.constant 0 : i32
    %9 = arith.cmpi eq, %arg2, %c0_i32_8 : i32
    %10 = arith.extui %9 : i1 to i32
    %c0_i32_9 = arith.constant 0 : i32
    %11 = arith.cmpi ne, %10, %c0_i32_9 : i32
    scf.if %11 {
      %c0_10 = arith.constant 0 : index
      %c0_11 = arith.constant 0 : index
      %12 = vector.load %arg7[%c0_10, %c0_11] : memref<16x64xf32, #tpu.memory_space<vmem>>, vector<16x64xf32>
      %c0_12 = arith.constant 0 : index
      %c0_13 = arith.constant 0 : index
      %13 = vector.load %arg5[%c0_12, %c0_13] : memref<1x64xf32, #tpu.memory_space<vmem>>, vector<1x64xf32>
      %14 = vector.broadcast %13 : vector<1x64xf32> to vector<16x64xf32>
      %15 = arith.addf %12, %14 : vector<16x64xf32>
      %c0_14 = arith.constant 0 : index
      %c0_15 = arith.constant 0 : index
      %16 = vector.load %arg6[%c0_14, %c0_15] : memref<16x64xf32, #tpu.memory_space<vmem>>, vector<16x64xf32>
      tpu.vector_store %arg6[%c0_14, %c0_15], %15 {strides = array<i32>} : memref<16x64xf32, #tpu.memory_space<vmem>>, vector<16x64xf32>,
    } else {
    }
    return
  }
  func.func @transform_0(%arg0: i32, %arg1: i32, %arg2: i32) -> (i32, i32) {
    %c0_i32 = arith.constant 0 : i32
    return %arg0, %arg2 : i32, i32
  }
  func.func @transform_1(%arg0: i32, %arg1: i32, %arg2: i32) -> (i32, i32) {
    %c0_i32 = arith.constant 0 : i32
    return %arg2, %arg1 : i32, i32
  }
  func.func @transform_2(%arg0: i32, %arg1: i32, %arg2: i32) -> (i32, i32) {
    %c0_i32 = arith.constant 0 : i32
    %c0_i32_0 = arith.constant 0 : i32
    return %c0_i32, %arg1 : i32, i32
  }
  func.func @transform_3(%arg0: i32, %arg1: i32, %arg2: i32) -> (i32, i32) {
    %c0_i32 = arith.constant 0 : i32
    return %arg0, %arg1 : i32, i32
  }
}

module attributes {stable_mosaic.version = 11 : i64} {
  func.func @_softmax_kernel(%arg0: i32, %arg1: memref<16x64xf32, #tpu.memory_space<vmem>>, %arg2: memref<16x64xf32, #tpu.memory_space<vmem>>) attributes {dimension_semantics = [#tpu.dimension_semantics<parallel>], iteration_bounds = array<i64: 1>, scalar_prefetch = 0 : i64, scratch_operands = 0 : i64, tpu.core_type = #tpu.core_type<tc>, window_params = [{transform_indices = @transform_0, window_bounds = array<i64: 16, 64>}, {transform_indices = @transform_1, window_bounds = array<i64: 16, 64>}]} {
    %c0 = arith.constant 0 : index
    %c0_0 = arith.constant 0 : index
    %0 = vector.load %arg1[%c0, %c0_0] : memref<16x64xf32, #tpu.memory_space<vmem>>, vector<16x64xf32>
    %cst = arith.constant dense<0xFF800000> : vector<16xf32>
    %1 = vector.multi_reduction <maximumf>, %0, %cst [1] : vector<16x64xf32> to vector<16xf32>
    %2 = vector.shape_cast %1 : vector<16xf32> to vector<16x1xf32>
    %3 = vector.broadcast %2 : vector<16x1xf32> to vector<16x64xf32>
    %4 = arith.subf %0, %3 : vector<16x64xf32>
    %5 = math.exp %4 : vector<16x64xf32>
    %cst_1 = arith.constant dense<0.000000e+00> : vector<16xf32>
    %6 = vector.multi_reduction <add>, %5, %cst_1 [1] : vector<16x64xf32> to vector<16xf32>
    %7 = vector.shape_cast %6 : vector<16xf32> to vector<16x1xf32>
    %8 = tpu.reciprocal %7 {approx = true} : vector<16x1xf32> -> vector<16x1xf32>
    %9 = vector.broadcast %8 : vector<16x1xf32> to vector<16x64xf32>
    %10 = arith.mulf %5, %9 : vector<16x64xf32>
    %c0_2 = arith.constant 0 : index
    %c0_3 = arith.constant 0 : index
    %11 = vector.load %arg2[%c0_2, %c0_3] : memref<16x64xf32, #tpu.memory_space<vmem>>, vector<16x64xf32>
    tpu.vector_store %arg2[%c0_2, %c0_3], %10 {strides = array<i32>} : memref<16x64xf32, #tpu.memory_space<vmem>>, vector<16x64xf32>,
    return
  }
  func.func @transform_0(%arg0: i32) -> (i32, i32) {
    %c0_i32 = arith.constant 0 : i32
    %c0_i32_0 = arith.constant 0 : i32
    return %arg0, %c0_i32 : i32, i32
  }
  func.func @transform_1(%arg0: i32) -> (i32, i32) {
    %c0_i32 = arith.constant 0 : i32
    %c0_i32_0 = arith.constant 0 : i32
    return %arg0, %c0_i32 : i32, i32
  }
}

</mosaic_0001>

<bundles_post_ra>
// kernel: _lambda_.17
= control target key start
LH: loop header
LB: loop body
LE: loop exit
PB: predicated region body
PF: predicated region fallthrough
CT: control target
= control target key end

     0   :  { %vm16_vm0 = vcmask 261120   ;;  %s118_s0 = inlined_call_operand.vmem [shape: f32[16,32], index: 0, kind: input, shape index: {}]   ;;  %s119_s1 = inlined_call_operand.vmem [shape: f32[1,32], index: 1, kind: input, shape index: {}]   ;;  %s120_s2 = inlined_call_operand.vmem [shape: f32[1,32], index: 2, kind: input, shape index: {}]   ;;  %s121_s3 = inlined_call_operand.vmem [shape: f32[16,32], index: 3, kind: output, shape index: {}]  }
   0x1   :  { %v14_v0 = vld [vmem:[%s118_s0] sm:$0xff]  ;;  %v15_v1 = vld [vmem:[%s118_s0 + $0x8] sm:$0xff] }
   0x2   :  { %v17_v2 = vsel %vm16_vm0, %v14_v0, 0.0  ;;  %v20_v3 = vsel %vm16_vm0, %v15_v1, 0.0  ;;  %v68_v21 = vld [vmem:[%s119_s1] ss:$0 sm:$0xff] }
   0x3   :  { %18 = vadd.xlane.f32.xlu0 %v17_v2  ;;  %v69_v23 = vld [vmem:[%s120_s2] ss:$0 sm:$0xff] }
   0x7   :  { %21 = vadd.xlane.f32.xlu0 %v20_v3 }
  0x8c   :  { %v19_v4 = vpop.xlane.xlu0 %18 }
  0x8d   :  { %v24_v5 = vmul.f32 0.03125, %v19_v4 }
  0x8f   :  { %v26_v6 = vsub.f32 %v14_v0, %v24_v5 }
  0x90   :  { %v22_v7 = vpop.xlane.xlu0 %21 }
  0x91   :  { %v25_v8 = vmul.f32 0.03125, %v22_v7  ;;  %v28_v9 = vmul.f32 %v26_v6, %v26_v6 }
  0x93   :  { %v27_v10 = vsub.f32 %v15_v1, %v25_v8  ;;  %v30_v11 = vsel %vm16_vm0, %v28_v9, 0.0 }
  0x94   :  { %31 = vadd.xlane.f32.xlu1 %v30_v11 }
  0x95   :  { %v29_v12 = vmul.f32 %v27_v10, %v27_v10 }
  0x97   :  { %v33_v13 = vsel %vm16_vm0, %v29_v12, 0.0 }
  0x98   :  { %34 = vadd.xlane.f32.xlu1 %v33_v13 }
 0x11d   :  { %v32_v14 = vpop.xlane.xlu1 %31 }
 0x11e   :  { %v36_v15 = vmul.f32 0.03125, %v32_v14 }
 0x120   :  { %v38_v16 = vadd.f32 1e-12, %v36_v15 }
 0x121   :  { %v35_v17 = vpop.xlane.xlu1 %34 }
 0x122   :  { %70 = vrsqrt.f32 %v38_v16  ;;  %v37_v18 = vmul.f32 0.03125, %v35_v17 }
 0x124   :  { %v39_v19 = vadd.f32 1e-12, %v37_v18 }
 0x126   :  { %72 = vrsqrt.f32 %v39_v19 }
 0x12f   :  { %v71_v20 = vpop.eup %70 }
 0x130   :  { %v42_v22 = vmul.f32 %v71_v20, %v26_v6 }
 0x132   :  { %v51_v24 = vmul.f32 %v68_v21, %v42_v22 }
 0x133   :  { %v73_v25 = vpop.eup %72 }
 0x134   :  { %v60_v26 = vadd.f32 %v69_v23, %v51_v24  ;;  %v43_v27 = vmul.f32 %v73_v25, %v27_v10 }
 0x136   :  { %62 = vst.msk [vmem:[%s121_s3] sm:$0xff] %vm16_vm0, %v60_v26  ;;  %v52_v28 = vmul.f32 %v68_v21, %v43_v27 }
 0x138   :  { %v61_v29 = vadd.f32 %v69_v23, %v52_v28 }
 0x13a   :  { %63 = vst.msk [vmem:[%s121_s3 + $0x8] sm:$0xff] %vm16_vm0, %v61_v29 }

// kernel: _lambda_.18
= control target key start
LH: loop header
LB: loop body
LE: loop exit
PB: predicated region body
PF: predicated region fallthrough
CT: control target
= control target key end

     0   :  { %vm19_vm0 = vcmask 785408   ;;  %v151_v0 = vmov 0.0   ;;  %vm152_vm1 = vmmov 0   ;;  %vm47_vm2 = vcmask 261120   ;;  %s195_s1 = inlined_call_operand.vmem [shape: bf16[32,96], index: 1, kind: input, shape index: {}]   ;;  %s196_s0 = inlined_call_operand.vmem [shape: bf16[16,32], index: 0, kind: input, shape index: {}]   ;;  %s197_s2 = inlined_call_operand.vmem [shape: f32[1,96], index: 2, kind: input, shape index: {}]   ;;  %s198_s3 = inlined_call_operand.vmem [shape: bf16[16,96], index: 3, kind: output, shape index: {}]  }
   0x1   :  { %138 = vmatprep.subr.bf16.mxu0 %v151_v0  ;;  %v148_v1 = vld [vmem:[%s195_s1 + $0x8] sm:$0xff]   ;;  %142 = vmatprep.mubr.msk.bf16.mxu0 %vm152_vm1, %v151_v0  ;;  %20 = vst.msk [vmem:[#allocation2] sm:$0xff] %vm19_vm0, %v151_v0  ;;  %21 = vst.msk [vmem:[#allocation2 + $0x8] sm:$0xff] %vm19_vm0, %v151_v0  ;;  %v149_v2 = vld [vmem:[%s195_s1] sm:$0xff]   ;;  %vm119_vm3 = vcmask 781312  }
   0x2   :  { %139 = vmatpush3.bf16.msra.mxu0 %v148_v1  ;;  %v150_v3 = vld [vmem:[%s196_s0] sm:$0xff]  }
   0x3   :  { %140 = vmatprep.subr.bf16.mxu0 %v151_v0  ;;  %v130_v12 = vld [vmem:[%s197_s2] ss:$0 sm:$0xff] }
   0x6   :  { %141 = vmatpush3.bf16.msra.mxu0 %v149_v2 }
   0x8   :  { %v22_v4 = vld [vmem:[#allocation2] sm:$0xff]  ;;  %v23_v8 = vld [vmem:[#allocation2 + $0x8] sm:$0xff] }
   0x9   :  { %143 = vmatmul.mubr.msk.bf16.vlgmr.msra.gmra.mxu0 %vm47_vm2, %v150_v3 }
  0xc9   :  { %v85_v5 = vpop.f32.mrf.mxu0 }
  0xca   :  { %v92_v6 = vadd.f32 %v85_v5, %v22_v4 }
  0xcb   :  { %v144_v7 = vpop.f32.mrf.mxu0 }
  0xcc   :  { %95 = vst.msk [vmem:[#allocation2] sm:$0xff] %vm19_vm0, %v92_v6 }
  0xcd   :  { %v88_v9 = vpop.f32.mrf.mxu0 }
  0xce   :  { %v93_v10 = vadd.f32 %v88_v9, %v23_v8 }
  0xcf   :  { %v145_v11 = vpop.f32.mrf.mxu0 }
  0xd0   :  { %96 = vst.msk [vmem:[#allocation2 + $0x8] sm:$0xff] %vm19_vm0, %v93_v10 }
  0xd3   :  { %v100_v13 = vld [vmem:[#allocation2] sm:$0xff] }
  0xd4   :  { %v109_v14 = vadd.f32 %v130_v12, %v100_v13 }
  0xd6   :  { %v133_v15 = vpack.c.bf16 %v109_v14, %v109_v14 }
  0xd7   :  { %v101_v16 = vld [vmem:[#allocation2 + $0x8] sm:$0xff] }
  0xd8   :  { %120 = vst.msk [vmem:[%s198_s3] sm:$0xf] %vm119_vm3, %v133_v15  ;;  %v110_v17 = vadd.f32 %v130_v12, %v101_v16 }
  0xda   :  { %v134_v18 = vpack.c.bf16 %v110_v17, %v110_v17 }
  0xdc   :  { %121 = vst.msk [vmem:[%s198_s3 + $0x4] sm:$0xf] %vm119_vm3, %v134_v18 }

// kernel: _lambda_.19
= control target key start
LH: loop header
LB: loop body
LE: loop exit
PB: predicated region body
PF: predicated region fallthrough
CT: control target
= control target key end

     0   :  { %s638_s12 = smov 0   ;;  %s640_s13 = smov 0   ;;  %s694_s0 = inlined_call_operand.vmem [shape: bf16[8,8,8], index: 0, kind: input, shape index: {}]   ;;  %s695_s1 = inlined_call_operand.vmem [shape: bf16[8,8,8], index: 1, kind: input, shape index: {}]   ;;  %s696_s2 = inlined_call_operand.vmem [shape: bf16[8,8,8], index: 2, kind: input, shape index: {}]   ;;  %s697_s3 = inlined_call_operand.vmem [shape: bf16[8,8,8], index: 3, kind: output, shape index: {}]  }
   0x1   :  { %s642_s14 = smov 0  }
   0x2 LB: > { %s32_s15 = sadd.s32 1, %s608_s13  ;;  %p529_p0 = scmp.ge.s32.totalorder %s612_s14, 1  ;;  %s612_s14 = sphi %s642_s14, %s13_s14   ;;  %s608_s13 = sphi %s640_s13, %s699_s13   ;;  %s604_s12 = sphi %s638_s12, %s698_s12  }
   0x3   : > { %p34_p1 = scmp.ge.s32.totalorder %s32_s15, 8  ;;  %p190_p2 = scmp.lt.s32.totalorder %s612_s14, 9 }
   0x5   : > { %s701_s15 = smov (%p34_p1, %s32_s15), 0  ;;  %p191_p3 = pnand %p529_p0, %p190_p2 }
   0x6   : > { %p232_p4 = scmp.lt.s32.totalorder (!%p191_p3), %s604_s12, 7 }
   0x7   : > { %194 = sbr.rel (%p191_p3) target bundleno = 794 (0x31a), region = 32 }
   0xc   : > { %vm268_vm0 = vcmask 64512   ;;  %v614_v0 = vmov 0.0   ;;  %vm615_vm1 = vmmov 0   ;;  %s703_s12 = smov (!%p232_p4, %s604_s12), 7  ;;  %vm265_vm2 = vcmask 7168  }
   0xd   : > { %542 = vmatprep.subr.bf16.mxu0 %v614_v0  ;;  %269 = vst.msk [vmem:[#allocation4] sm:$0xff] %vm268_vm0, %v614_v0  ;;  %544 = vmatprep.mubr.msk.bf16.mxu0 %vm615_vm1, %v614_v0  ;;  %s657_s16 = sshll.u32 %s703_s12, 2  ;;  %v616_v4 = vmov -inf   ;;  %v617_v11 = vmov 0   ;;  %vm356_vm3 = vcmask 1043456   ;;  %vm416_vm4 = vcmask 60416  }
   0xe   : > { %548 = vmatprep.subr.bf16.mxu1 %v614_v0  ;;  %550 = vmatprep.mubr.msk.bf16.mxu1 %vm615_vm1, %v614_v0  ;;  %s245_s19 = scalar_lea.vmem %s695_s1, %s657_s16  ;;  %s238_s22 = scalar_lea.vmem %s694_s0, %s657_s16  ;;  %266 = vst.msk [vmem:[#allocation2] sm:$0xff] %vm265_vm2, %v616_v4  ;;  %267 = vst.msk [vmem:[#allocation3] sm:$0xff] %vm265_vm2, %v614_v0 }
   0xf   : > { %v271_v1 = vld [vmem:[%s245_s19] sm:$0xf]  ;;  %582 = vset.pattern.permute.xlu0 %v617_v11  ;;  %583 = vset.pattern.permute.xlu1 %v617_v11  ;;  %s252_s25 = scalar_lea.vmem %s696_s2, %s657_s16  ;;  %s259_s28 = scalar_lea.vmem %s697_s3, %s657_s16 }
  0x10   : > { %v278_v2 = vsel %vm268_vm0, %v271_v1, 0  ;;  %v270_v3 = vld [vmem:[%s238_s22] sm:$0xf] }
  0x11   : > { %543 = vmatpush3.bf16.xpose.msra.mxu0 %v278_v2  ;;  %v272_v16 = vld [vmem:[%s252_s25] sm:$0xf] }
  0x12   : > { %v358_v17 = vsel %vm356_vm3, %v272_v16, 0 }
  0x13   : > { %549 = vmatpush3.bf16.msra.mxu1 %v358_v17 }
  0x14   : > { %v345_v32 = vld [vmem:[#allocation4] sm:$0xff] }
  0x15   : > { %v321_v12 = vld [vmem:[#allocation2] sm:$0xff]  ;;  %v337_v26 = vld [vmem:[#allocation3] sm:$0xff] }
  0x18   : > { %545 = vmatmul.mubr.msk.bf16.vlgmr.msra.gmra.mxu0 %vm268_vm0, %v270_v3 }
  0xd8   : > { %v314_v5 = vpop.f32.mrf.mxu0 }
  0xd9   : > { %v320_v6 = vmul.f32 0.35355338, %v314_v5 }
  0xda   : > { %v546_v7 = vpop.f32.mrf.mxu0 }
  0xdb   : > { %v322_v8 = vsel %vm268_vm0, %v320_v6, -inf }
  0xdc   : > { %323 = vmax.xlane.f32.xlu0 %v322_v8  ;;  %v317_v9 = vpop.f32.mrf.mxu0 }
  0xde   : > { %v547_v10 = vpop.f32.mrf.mxu0 }
 0x165   : > { %v324_v13 = vpop.xlane.xlu0 %323 }
 0x166   : > { %v325_v14 = vmax.f32 %v321_v12, %v324_v13 }
 0x168   : > { %v326_v15 = vsub.f32 %v321_v12, %v325_v14  ;;  %402 = vst.msk [vmem:[#allocation2] sm:$0xff] %vm265_vm2, %v325_v14  ;;  %331 = vperm.xlu0 %582, %v325_v14  }
 0x16a   : > { %v327_v22 = vmul.f32 1.442695, %v326_v15 }
 0x1e3   : > { %v332_v18 = vpop.permute.xlu0 %331 }
 0x1e4   : > { %v334_v19 = vsub.f32 %v320_v6, %v332_v18 }
 0x1e6   : > { %v335_v20 = vmul.f32 1.442695, %v334_v19 }
 0x1e8   : > { %584 = vpow2.f32 %v335_v20 }
 0x1e9   : > { %586 = vpow2.f32 %v327_v22 }
 0x1f5   : > { %v585_v21 = vpop.eup %584 }
 0x1f6   : > { %v339_v23 = vsel %vm268_vm0, %v585_v21, 0.0  ;;  %v352_v24 = vpack.c.bf16 %v585_v21, %v585_v21  ;;  %v587_v25 = vpop.eup %586 }
 0x1f7   : > { %340 = vadd.xlane.f32.xlu1 %v339_v23  ;;  %v338_v27 = vmul.f32 %v587_v25, %v337_v26 }
 0x1f8   : > { %551 = vmatmul.mubr.msk.bf16.vlgmr.msra.gmra.mxu1 %vm268_vm0, %v352_v24 }
 0x208   : > { %348 = vperm.xlu1 %583, %v587_v25  }
 0x280   : > { %v341_v28 = vpop.xlane.xlu1 %340 }
 0x281   : > { %v342_v29 = vadd.f32 %v341_v28, %v338_v27 }
 0x283   : > { %344 = vst.msk [vmem:[#allocation3] sm:$0xff] %vm265_vm2, %v342_v29 }
 0x284   : > { %v349_v33 = vpop.permute.xlu1 %348 }
 0x285   : > { %v351_v34 = vmul.f32 %v349_v33, %v345_v32 }
 0x28a   : > { %v407_v30 = vld [vmem:[#allocation3] sm:$0xff] }
 0x28b   : > { %588 = vrcp.f32 %v407_v30 }
 0x298   : > { %v589_v31 = vpop.eup %588 }
 0x299   : > { %411 = vperm.xlu1 %583, %v589_v31  }
 0x2b8   : > { %v394_v35 = vpop.f32.mrf.mxu1 }
 0x2b9   : > { %v400_v36 = vadd.f32 %v394_v35, %v351_v34 }
 0x2ba   : > { %v552_v37 = vpop.f32.mrf.mxu1 }
 0x2bb   : > { %401 = vst.msk [vmem:[#allocation4] sm:$0xff] %vm268_vm0, %v400_v36 }
 0x2bc   : > { %v397_v38 = vpop.f32.mrf.mxu1 }
 0x2be   : > { %v553_v39 = vpop.f32.mrf.mxu1 }
 0x2c2   : > { %v406_v40 = vld [vmem:[#allocation4] sm:$0xff] }
 0x314   : > { %v412_v41 = vpop.permute.xlu1 %411 }
 0x315   : > { %v414_v42 = vmul.f32 %v412_v41, %v406_v40 }
 0x317   : > { %v415_v43 = vpack.c.bf16 %v414_v42, %v414_v42 }
 0x319   : > { %417 = vst.msk [vmem:[%s259_s28] sm:$0xf] %vm416_vm4, %v415_v43 }
 0x31a PF: > { %s13_s14 = sadd.s32 1, %s612_s14   ;;  %s698_s12 = smov %s608_s13 }
 0x31b   : > { %p10_p5 = scmp.ge.s32.totalorder %s13_s14, 10   ;;  %s699_s13 = smov %s701_s15 }
 0x31d   :  { %12 = sbr.rel (!%p10_p5) target bundleno = 2 (0x2), region = 76 }

// kernel: _lambda_.20
= control target key start
LH: loop header
LB: loop body
LE: loop exit
PB: predicated region body
PF: predicated region fallthrough
CT: control target
= control target key end

     0   :  { %vm19_vm0 = vcmask 261120   ;;  %v137_v0 = vmov 0.0   ;;  %vm138_vm1 = vmmov 0   ;;  %s184_s1 = inlined_call_operand.vmem [shape: bf16[32,32], index: 1, kind: input, shape index: {}]   ;;  %s185_s0 = inlined_call_operand.vmem [shape: bf16[16,32], index: 0, kind: input, shape index: {}]   ;;  %s186_s2 = inlined_call_operand.vmem [shape: f32[1,32], index: 2, kind: input, shape index: {}]   ;;  %s187_s3 = inlined_call_operand.vmem [shape: f32[16,32], index: 3, kind: output, shape index: {}]  }
   0x1   :  { %124 = vmatprep.subr.bf16.mxu0 %v137_v0  ;;  %v134_v1 = vld [vmem:[%s184_s1 + $0x8] sm:$0xff]   ;;  %128 = vmatprep.mubr.msk.bf16.mxu0 %vm138_vm1, %v137_v0  ;;  %20 = vst.msk [vmem:[#allocation2] sm:$0xff] %vm19_vm0, %v137_v0  ;;  %21 = vst.msk [vmem:[#allocation2 + $0x8] sm:$0xff] %vm19_vm0, %v137_v0  ;;  %v135_v2 = vld [vmem:[%s184_s1] sm:$0xff]  }
   0x2   :  { %125 = vmatpush3.bf16.msra.mxu0 %v134_v1  ;;  %v136_v3 = vld [vmem:[%s185_s0] sm:$0xff]  }
   0x3   :  { %126 = vmatprep.subr.bf16.mxu0 %v137_v0  ;;  %v120_v12 = vld [vmem:[%s186_s2] ss:$0 sm:$0xff] }
   0x6   :  { %127 = vmatpush3.bf16.msra.mxu0 %v135_v2 }
   0x8   :  { %v22_v4 = vld [vmem:[#allocation2] sm:$0xff]  ;;  %v23_v8 = vld [vmem:[#allocation2 + $0x8] sm:$0xff] }
   0x9   :  { %129 = vmatmul.mubr.msk.bf16.vlgmr.msra.gmra.mxu0 %vm19_vm0, %v136_v3 }
  0xc9   :  { %v85_v5 = vpop.f32.mrf.mxu0 }
  0xca   :  { %v92_v6 = vadd.f32 %v85_v5, %v22_v4 }
  0xcb   :  { %v130_v7 = vpop.f32.mrf.mxu0 }
  0xcc   :  { %94 = vst.msk [vmem:[#allocation2] sm:$0xff] %vm19_vm0, %v92_v6 }
  0xcd   :  { %v88_v9 = vpop.f32.mrf.mxu0 }
  0xce   :  { %v93_v10 = vadd.f32 %v88_v9, %v23_v8 }
  0xcf   :  { %v131_v11 = vpop.f32.mrf.mxu0 }
  0xd0   :  { %95 = vst.msk [vmem:[#allocation2 + $0x8] sm:$0xff] %vm19_vm0, %v93_v10 }
  0xd3   :  { %v99_v13 = vld [vmem:[#allocation2] sm:$0xff] }
  0xd4   :  { %v108_v14 = vadd.f32 %v120_v12, %v99_v13 }
  0xd6   :  { %110 = vst.msk [vmem:[%s187_s3] sm:$0xff] %vm19_vm0, %v108_v14 }
  0xd7   :  { %v100_v15 = vld [vmem:[#allocation2 + $0x8] sm:$0xff] }
  0xd8   :  { %v109_v16 = vadd.f32 %v120_v12, %v100_v15 }
  0xda   :  { %111 = vst.msk [vmem:[%s187_s3 + $0x8] sm:$0xff] %vm19_vm0, %v109_v16 }

// kernel: _lambda_.22
= control target key start
LH: loop header
LB: loop body
LE: loop exit
PB: predicated region body
PF: predicated region fallthrough
CT: control target
= control target key end

     0   :  { %v167_v0 = vmov 0.0   ;;  %vm168_vm0 = vmmov 0   ;;  %vm46_vm1 = vcmask 261120   ;;  %s204_s1 = inlined_call_operand.vmem [shape: bf16[32,128], index: 1, kind: input, shape index: {}]   ;;  %s205_s0 = inlined_call_operand.vmem [shape: bf16[16,32], index: 0, kind: input, shape index: {}]   ;;  %s206_s2 = inlined_call_operand.vmem [shape: f32[1,128], index: 2, kind: input, shape index: {}]   ;;  %s207_s3 = inlined_call_operand.vmem [shape: bf16[16,128], index: 3, kind: output, shape index: {}]  }
   0x1   :  { %150 = vmatprep.subr.bf16.mxu0 %v167_v0  ;;  %v160_v1 = vld [vmem:[%s204_s1 + $0x8] sm:$0xff]   ;;  %154 = vmatprep.mubr.msk.bf16.mxu0 %vm168_vm0, %v167_v0  ;;  %v161_v2 = vld [vmem:[%s204_s1] sm:$0xff]  }
   0x2   :  { %151 = vmatpush3.bf16.msra.mxu0 %v160_v1  ;;  %v162_v3 = vld [vmem:[%s205_s0] sm:$0xff]  }
   0x3   :  { %152 = vmatprep.subr.bf16.mxu0 %v167_v0  ;;  %v137_v4 = vld [vmem:[%s206_s2] ss:$0 sm:$0xff] }
   0x6   :  { %153 = vmatpush3.bf16.msra.mxu0 %v161_v2 }
   0x9   :  { %155 = vmatmul.mubr.msk.bf16.vlgmr.msra.gmra.mxu0 %vm46_vm1, %v162_v3 }
  0xc9   :  { %v84_v5 = vpop.f32.mrf.mxu0 }
  0xca   :  { %v107_v6 = vadd.f32 %v137_v4, %v84_v5 }
  0xcb   :  { %v156_v7 = vpop.f32.mrf.mxu0 }
  0xcc   :  { %v111_v8 = vmul.f32 0.70710677, %v107_v6  ;;  %v109_v16 = vmul.f32 0.5, %v107_v6 }
  0xcd   :  { %v87_v9 = vpop.f32.mrf.mxu0 }
  0xce   :  { %163 = verf.f32 %v111_v8  ;;  %v108_v10 = vadd.f32 %v137_v4, %v87_v9 }
  0xcf   :  { %v157_v11 = vpop.f32.mrf.mxu0 }
  0xd0   :  { %v112_v12 = vmul.f32 0.70710677, %v108_v10  ;;  %v110_v17 = vmul.f32 0.5, %v108_v10 }
  0xd2   :  { %165 = verf.f32 %v112_v12 }
  0xdb   :  { %v164_v13 = vpop.eup %163 }
  0xdc   :  { %v115_v14 = vadd.f32 1.0, %v164_v13 }
  0xde   :  { %v117_v19 = vmul.f32 %v115_v14, %v109_v16 }
  0xdf   :  { %v166_v15 = vpop.eup %165 }
  0xe0   :  { %v116_v18 = vadd.f32 1.0, %v166_v15 }
  0xe2   :  { %v118_v20 = vmul.f32 %v116_v18, %v110_v17 }
  0xe4   :  { %v145_v21 = vpack.c.bf16 %v118_v20, %v117_v19 }
  0xe6   :  { %146 = vst [vmem:[%s207_s3] sm:$0xff] %v145_v21  }

// kernel: _lambda_.21
= control target key start
LH: loop header
LB: loop body
LE: loop exit
PB: predicated region body
PF: predicated region fallthrough
CT: control target
= control target key end

     0   :  { %vm23_vm0 = vcmask 261120   ;;  %s136_s0 = inlined_call_operand.vmem [shape: f32[16,32], index: 0, kind: input, shape index: {}]   ;;  %s137_s1 = inlined_call_operand.vmem [shape: f32[16,32], index: 1, kind: input, shape index: {}]   ;;  %s138_s2 = inlined_call_operand.vmem [shape: f32[1,32], index: 2, kind: input, shape index: {}]   ;;  %s139_s3 = inlined_call_operand.vmem [shape: f32[1,32], index: 3, kind: input, shape index: {}]   ;;  %s140_s4 = inlined_call_operand.vmem [shape: f32[16,32], index: 4, kind: output, shape index: {}]  }
   0x1   :  { %v17_v0 = vld [vmem:[%s136_s0] sm:$0xff]  ;;  %v18_v2 = vld [vmem:[%s136_s0 + $0x8] sm:$0xff] }
   0x2   :  { %v19_v1 = vld [vmem:[%s137_s1] sm:$0xff]  ;;  %v20_v4 = vld [vmem:[%s137_s1 + $0x8] sm:$0xff] }
   0x3   :  { %v21_v3 = vadd.f32 %v19_v1, %v17_v0  ;;  %v22_v5 = vadd.f32 %v20_v4, %v18_v2  ;;  %v75_v25 = vld [vmem:[%s138_s2] ss:$0 sm:$0xff] }
   0x4   :  { %v76_v27 = vld [vmem:[%s139_s3] ss:$0 sm:$0xff] }
   0x5   :  { %v24_v6 = vsel %vm23_vm0, %v21_v3, 0.0  ;;  %v27_v7 = vsel %vm23_vm0, %v22_v5, 0.0 }
   0x6   :  { %25 = vadd.xlane.f32.xlu0 %v24_v6 }
   0xa   :  { %28 = vadd.xlane.f32.xlu0 %v27_v7 }
  0x8f   :  { %v26_v8 = vpop.xlane.xlu0 %25 }
  0x90   :  { %v31_v9 = vmul.f32 0.03125, %v26_v8 }
  0x92   :  { %v33_v10 = vsub.f32 %v21_v3, %v31_v9 }
  0x93   :  { %v29_v11 = vpop.xlane.xlu0 %28 }
  0x94   :  { %v32_v12 = vmul.f32 0.03125, %v29_v11  ;;  %v35_v13 = vmul.f32 %v33_v10, %v33_v10 }
  0x96   :  { %v34_v14 = vsub.f32 %v22_v5, %v32_v12  ;;  %v37_v15 = vsel %vm23_vm0, %v35_v13, 0.0 }
  0x97   :  { %38 = vadd.xlane.f32.xlu1 %v37_v15 }
  0x98   :  { %v36_v16 = vmul.f32 %v34_v14, %v34_v14 }
  0x9a   :  { %v40_v17 = vsel %vm23_vm0, %v36_v16, 0.0 }
  0x9b   :  { %41 = vadd.xlane.f32.xlu1 %v40_v17 }
 0x120   :  { %v39_v18 = vpop.xlane.xlu1 %38 }
 0x121   :  { %v43_v19 = vmul.f32 0.03125, %v39_v18 }
 0x123   :  { %v45_v20 = vadd.f32 1e-12, %v43_v19 }
 0x124   :  { %v42_v21 = vpop.xlane.xlu1 %41 }
 0x125   :  { %77 = vrsqrt.f32 %v45_v20  ;;  %v44_v22 = vmul.f32 0.03125, %v42_v21 }
 0x127   :  { %v46_v23 = vadd.f32 1e-12, %v44_v22 }
 0x129   :  { %79 = vrsqrt.f32 %v46_v23 }
 0x132   :  { %v78_v24 = vpop.eup %77 }
 0x133   :  { %v49_v26 = vmul.f32 %v78_v24, %v33_v10 }
 0x135   :  { %v58_v28 = vmul.f32 %v75_v25, %v49_v26 }
 0x136   :  { %v80_v29 = vpop.eup %79 }
 0x137   :  { %v67_v30 = vadd.f32 %v76_v27, %v58_v28  ;;  %v50_v31 = vmul.f32 %v80_v29, %v34_v14 }
 0x139   :  { %69 = vst.msk [vmem:[%s140_s4] sm:$0xff] %vm23_vm0, %v67_v30  ;;  %v59_v32 = vmul.f32 %v75_v25, %v50_v31 }
 0x13b   :  { %v68_v33 = vadd.f32 %v76_v27, %v59_v32 }
 0x13d   :  { %70 = vst.msk [vmem:[%s140_s4 + $0x8] sm:$0xff] %vm23_vm0, %v68_v33 }

// kernel: _lambda_.23
= control target key start
LH: loop header
LB: loop body
LE: loop exit
PB: predicated region body
PF: predicated region fallthrough
CT: control target
= control target key end

     0   :  { %vm19_vm0 = vcmask 261120   ;;  %v212_v0 = vmov 0.0   ;;  %vm213_vm1 = vmmov 0   ;;  %s276_s1 = inlined_call_operand.vmem [shape: bf16[128,32], index: 1, kind: input, shape index: {}]   ;;  %s277_s0 = inlined_call_operand.vmem [shape: bf16[16,128], index: 0, kind: input, shape index: {}]   ;;  %s278_s2 = inlined_call_operand.vmem [shape: f32[1,32], index: 2, kind: input, shape index: {}]   ;;  %s279_s3 = inlined_call_operand.vmem [shape: f32[16,32], index: 3, kind: output, shape index: {}]  }
   0x1   :  { %181 = vmatprep.subr.bf16.mxu0 %v212_v0  ;;  %v203_v1 = vld [vmem:[%s276_s1 + $0x38] sm:$0xff]   ;;  %197 = vmatprep.mubr.msk.bf16.mxu0 %vm213_vm1, %v212_v0  ;;  %20 = vst.msk [vmem:[#allocation2] sm:$0xff] %vm19_vm0, %v212_v0  ;;  %21 = vst.msk [vmem:[#allocation2 + $0x8] sm:$0xff] %vm19_vm0, %v212_v0  ;;  %v204_v2 = vld [vmem:[%s276_s1 + $0x30] sm:$0xff]  }
   0x2   :  { %182 = vmatpush3.bf16.msra.mxu0 %v203_v1  ;;  %v205_v3 = vld [vmem:[%s276_s1 + $0x28] sm:$0xff]   ;;  %v206_v4 = vld [vmem:[%s276_s1 + $0x20] sm:$0xff]   ;;  %v207_v5 = vld [vmem:[%s276_s1 + $0x18] sm:$0xff]  }
   0x3   :  { %183 = vmatprep.subr.bf16.mxu0 %v212_v0  ;;  %v208_v6 = vld [vmem:[%s276_s1 + $0x10] sm:$0xff]   ;;  %v209_v7 = vld [vmem:[%s276_s1 + $0x8] sm:$0xff]   ;;  %v210_v8 = vld [vmem:[%s276_s1] sm:$0xff]  }
   0x4   :  { %v211_v9 = vld [vmem:[%s277_s0] sm:$0xff]  }
   0x5   :  { %v171_v18 = vld [vmem:[%s278_s2] ss:$0 sm:$0xff] }
   0x6   :  { %184 = vmatpush3.bf16.msra.mxu0 %v204_v2 }
   0x7   :  { %185 = vmatprep.subr.bf16.mxu0 %v212_v0 }
   0x8   :  { %v22_v10 = vld [vmem:[#allocation2] sm:$0xff]  ;;  %v23_v14 = vld [vmem:[#allocation2 + $0x8] sm:$0xff] }
   0xa   :  { %186 = vmatpush3.bf16.msra.mxu0 %v205_v3 }
   0xb   :  { %187 = vmatprep.subr.bf16.mxu0 %v212_v0 }
   0xe   :  { %188 = vmatpush3.bf16.msra.mxu0 %v206_v4 }
   0xf   :  { %189 = vmatprep.subr.bf16.mxu0 %v212_v0 }
  0x12   :  { %190 = vmatpush3.bf16.msra.mxu0 %v207_v5 }
  0x13   :  { %191 = vmatprep.subr.bf16.mxu0 %v212_v0 }
  0x16   :  { %192 = vmatpush3.bf16.msra.mxu0 %v208_v6 }
  0x17   :  { %193 = vmatprep.subr.bf16.mxu0 %v212_v0 }
  0x1a   :  { %194 = vmatpush3.bf16.msra.mxu0 %v209_v7 }
  0x1b   :  { %195 = vmatprep.subr.bf16.mxu0 %v212_v0 }
  0x1e   :  { %196 = vmatpush3.bf16.msra.mxu0 %v210_v8 }
  0x21   :  { %198 = vmatmul.mubr.bf16.vlgmr.msra.gmra.mxu0 %v211_v9 }
  0xe1   :  { %v130_v11 = vpop.f32.mrf.mxu0 }
  0xe2   :  { %v137_v12 = vadd.f32 %v130_v11, %v22_v10 }
  0xe3   :  { %v199_v13 = vpop.f32.mrf.mxu0 }
  0xe4   :  { %140 = vst.msk [vmem:[#allocation2] sm:$0xff] %vm19_vm0, %v137_v12 }
  0xe5   :  { %v133_v15 = vpop.f32.mrf.mxu0 }
  0xe6   :  { %v138_v16 = vadd.f32 %v133_v15, %v23_v14 }
  0xe7   :  { %v200_v17 = vpop.f32.mrf.mxu0 }
  0xe8   :  { %141 = vst.msk [vmem:[#allocation2 + $0x8] sm:$0xff] %vm19_vm0, %v138_v16 }
  0xeb   :  { %v145_v19 = vld [vmem:[#allocation2] sm:$0xff] }
  0xec   :  { %v154_v20 = vadd.f32 %v171_v18, %v145_v19 }
  0xee   :  { %156 = vst.msk [vmem:[%s279_s3] sm:$0xff] %vm19_vm0, %v154_v20 }
  0xef   :  { %v146_v21 = vld [vmem:[#allocation2 + $0x8] sm:$0xff] }
  0xf0   :  { %v155_v22 = vadd.f32 %v171_v18, %v146_v21 }
  0xf2   :  { %157 = vst.msk [vmem:[%s279_s3 + $0x8] sm:$0xff] %vm19_vm0, %v155_v22 }

// kernel: _lambda_.32
= control target key start
LH: loop header
LB: loop body
LE: loop exit
PB: predicated region body
PF: predicated region fallthrough
CT: control target
= control target key end

     0   :  { %vm19_vm0 = vcmask 523264   ;;  %v138_v0 = vmov 0.0   ;;  %vm139_vm1 = vmmov 0   ;;  %vm47_vm2 = vcmask 261120   ;;  %s184_s1 = inlined_call_operand.vmem [shape: bf16[32,64], index: 1, kind: input, shape index: {}]   ;;  %s185_s0 = inlined_call_operand.vmem [shape: bf16[16,32], index: 0, kind: input, shape index: {}]   ;;  %s186_s2 = inlined_call_operand.vmem [shape: f32[1,64], index: 2, kind: input, shape index: {}]   ;;  %s187_s3 = inlined_call_operand.vmem [shape: f32[16,64], index: 3, kind: output, shape index: {}]  }
   0x1   :  { %125 = vmatprep.subr.bf16.mxu0 %v138_v0  ;;  %v135_v1 = vld [vmem:[%s184_s1 + $0x8] sm:$0xff]   ;;  %129 = vmatprep.mubr.msk.bf16.mxu0 %vm139_vm1, %v138_v0  ;;  %20 = vst.msk [vmem:[#allocation2] sm:$0xff] %vm19_vm0, %v138_v0  ;;  %21 = vst.msk [vmem:[#allocation2 + $0x8] sm:$0xff] %vm19_vm0, %v138_v0  ;;  %v136_v2 = vld [vmem:[%s184_s1] sm:$0xff]  }
   0x2   :  { %126 = vmatpush3.bf16.msra.mxu0 %v135_v1  ;;  %v137_v3 = vld [vmem:[%s185_s0] sm:$0xff]  }
   0x3   :  { %127 = vmatprep.subr.bf16.mxu0 %v138_v0  ;;  %v121_v12 = vld [vmem:[%s186_s2] ss:$0 sm:$0xff] }
   0x6   :  { %128 = vmatpush3.bf16.msra.mxu0 %v136_v2 }
   0x8   :  { %v22_v4 = vld [vmem:[#allocation2] sm:$0xff]  ;;  %v23_v8 = vld [vmem:[#allocation2 + $0x8] sm:$0xff] }
   0x9   :  { %130 = vmatmul.mubr.msk.bf16.vlgmr.msra.gmra.mxu0 %vm47_vm2, %v137_v3 }
  0xc9   :  { %v85_v5 = vpop.f32.mrf.mxu0 }
  0xca   :  { %v92_v6 = vadd.f32 %v85_v5, %v22_v4 }
  0xcb   :  { %v131_v7 = vpop.f32.mrf.mxu0 }
  0xcc   :  { %95 = vst.msk [vmem:[#allocation2] sm:$0xff] %vm19_vm0, %v92_v6 }
  0xcd   :  { %v88_v9 = vpop.f32.mrf.mxu0 }
  0xce   :  { %v93_v10 = vadd.f32 %v88_v9, %v23_v8 }
  0xcf   :  { %v132_v11 = vpop.f32.mrf.mxu0 }
  0xd0   :  { %96 = vst.msk [vmem:[#allocation2 + $0x8] sm:$0xff] %vm19_vm0, %v93_v10 }
  0xd3   :  { %v100_v13 = vld [vmem:[#allocation2] sm:$0xff] }
  0xd4   :  { %v109_v14 = vadd.f32 %v121_v12, %v100_v13 }
  0xd6   :  { %111 = vst.msk [vmem:[%s187_s3] sm:$0xff] %vm19_vm0, %v109_v14 }
  0xd7   :  { %v101_v15 = vld [vmem:[#allocation2 + $0x8] sm:$0xff] }
  0xd8   :  { %v110_v16 = vadd.f32 %v121_v12, %v101_v15 }
  0xda   :  { %112 = vst.msk [vmem:[%s187_s3 + $0x8] sm:$0xff] %vm19_vm0, %v110_v16 }

// kernel: _lambda_.33
= control target key start
LH: loop header
LB: loop body
LE: loop exit
PB: predicated region body
PF: predicated region fallthrough
CT: control target
= control target key end

     0   :  { %vm11_vm0 = vcmask 523264   ;;  %s113_s0 = inlined_call_operand.vmem [shape: f32[16,64], index: 0, kind: input, shape index: {}]   ;;  %s114_s1 = inlined_call_operand.hbm [shape: f32[16,64], index: 1, kind: output, shape index: {}]  }
   0x1   :  { %v9_v0 = vld [vmem:[%s113_s0] sm:$0xff]  ;;  %v10_v1 = vld [vmem:[%s113_s0 + $0x8] sm:$0xff] }
   0x2   :  { %6 = vsyncpa [#allocation3], 0  ;;  %v12_v2 = vsel %vm11_vm0, %v9_v0, -inf  ;;  %v15_v3 = vsel %vm11_vm0, %v10_v1, -inf  ;;  %s85_s0 = smov [#allocation2]  }
   0x3   :  { %13 = vmax.xlane.f32.xlu0 %v12_v2  ;;  %s41_s10 = sshll.u32 %s85_s0, 4  ;;  %s42_s10 = int_to_ptr.vmem [resolvable:$true] %s41_s10 }
   0x4   :  { %s63_s11 = scalar_lea.vmem %s42_s10, 256  ;;  %p68_p1 = scmp.lt.s32.totalorder %s42_s10, %s42_s10 }
   0x5   :  { %p64_p0 = scmp.ne.s32.totalorder %s42_s10, %s63_s11  ;;  %p69_p2 = scmp.lt.s32.totalorder %s63_s11, %s63_s11 }
   0x7   :  { %16 = vmax.xlane.f32.xlu0 %v15_v3  ;;  %p70_p3 = por %p69_p2, %p68_p1 }
   0x9   :  { %p71_p4 = pnand %p70_p3, %p64_p0 }
  0x8c   :  { %v14_v4 = vpop.xlane.xlu0 %13 }
  0x8d   :  { %v18_v5 = vsub.f32 %v9_v0, %v14_v4 }
  0x8f   :  { %v20_v6 = vmul.f32 1.442695, %v18_v5 }
  0x90   :  { %v17_v7 = vpop.xlane.xlu0 %16 }
  0x91   :  { %55 = vpow2.f32 %v20_v6  ;;  %v19_v8 = vsub.f32 %v10_v1, %v17_v7 }
  0x93   :  { %v22_v9 = vmul.f32 1.442695, %v19_v8 }
  0x95   :  { %57 = vpow2.f32 %v22_v9 }
  0x9e   :  { %v56_v10 = vpop.eup %55 }
  0x9f   :  { %v24_v11 = vsel %vm11_vm0, %v56_v10, 0.0 }
  0xa0   :  { %25 = vadd.xlane.f32.xlu1 %v24_v11 }
  0xa2   :  { %v58_v12 = vpop.eup %57 }
  0xa3   :  { %v27_v13 = vsel %vm11_vm0, %v58_v12, 0.0 }
  0xa4   :  { %28 = vadd.xlane.f32.xlu1 %v27_v13 }
 0x129   :  { %v26_v14 = vpop.xlane.xlu1 %25 }
 0x12a   :  { %59 = vrcp.f32 %v26_v14 }
 0x12d   :  { %v29_v15 = vpop.xlane.xlu1 %28 }
 0x12e   :  { %61 = vrcp.f32 %v29_v15 }
 0x137   :  { %v60_v16 = vpop.eup %59 }
 0x138   :  { %v32_v17 = vmul.f32 %v60_v16, %v56_v10 }
 0x13a   :  { %34 = vst.msk [vmem:[#allocation2] sm:$0xff] %vm11_vm0, %v32_v17 }
 0x13b   :  { %v62_v18 = vpop.eup %61 }
 0x13c   :  { %v33_v19 = vmul.f32 %v62_v18, %v58_v12 }
 0x13e   :  { %35 = vst.msk [vmem:[#allocation2 + $0x8] sm:$0xff] %vm11_vm0, %v33_v19 }
 0x13f   :  { %74 = shalt.err (!%p71_p4)
}
 0x140   :  { %s86_s12 = smov 128   ;;  %s87_s13 = smov 8  }
 0x141   :  { %47 = dma.vmem_to_hbm [thread:$0]  %s42_s10, 256, %s114_s1, [#allocation3], %s86_s12, %s86_s12, %s87_s13  }
 0x142   :  { %83 = dma.done.wait [#allocation3], 256  }
 0x143   :  { %84 = vsyncadd [#allocation3], 4294967040 }
 0x144   :  { %51 = vsyncpa [#allocation3], 1 }

</bundles_post_ra>
